<compile_context>
chip_gen: v5e
topology: v5e:2x2
jax: 0.10.0
libtpu: 0.0.40
codegen_flags: <defaults>
</compile_context>

<pallas_src>
import jax
import jax.numpy as jnp
from jax import lax
from jax.experimental import pallas as pl
from jax.experimental.pallas import tpu as pltpu

N_STEPS = 8          # fixed Euler steps for the CNF integration
T_FINAL = 1.0
_LANES = 128
_SUB = 8


def _round_up(v, m):
    return (v + m - 1) // m * m


def _param_layout(D, H, C, S):
    """Sublane-aligned row offsets of each segment inside the packed param slab."""
    lay = {}
    row = 0
    for name, n in (("w1t", H), ("tbt", H), ("w2a", H),
                    ("b2", 1), ("mu", C), ("inv", C * D), ("logc", 1)):
        lay[name] = row
        row = _round_up(row + n, _SUB)
    lay["rows"] = row
    return lay


def _make_kernel(D, H, C, S, BT, OUT_ROWS, lay):
    R_W1, R_TB, R_W2 = lay["w1t"], lay["tbt"], lay["w2a"]
    R_B2, R_MU, R_IV, R_LC = lay["b2"], lay["mu"], lay["inv"], lay["logc"]

    def kernel(in_ref, p_ref, out_ref):
        # batch lives on LANES; each feature / the label is one sublane row
        x_rows = [in_ref[d:d + 1, :] for d in range(D)]     # D x (1, BT)
        lab = in_ref[D:D + 1, :]                             # (1, BT) labels as f32

        # full-lane-width parameter row blocks (lane slices only on register values)
        w1t = p_ref[pl.ds(R_W1, H), :]      # (H,128) lanes 0..D-1 = W1^T
        tbt = p_ref[pl.ds(R_TB, H), :]      # (H,128) lanes 0..S-1 = (t_s*wt + b1)^T
        w2a = p_ref[pl.ds(R_W2, H), :]      # (H,128) lanes 0..D-1 = dt*W2, lane D = dt*diag(W2@W1)
        b2r = p_ref[pl.ds(R_B2, 1), :]      # (1,128) lanes 0..D-1 = dt*b2
        mus = p_ref[pl.ds(R_MU, C), :]      # (C,128) lanes 0..D-1 = means
        ivs = p_ref[pl.ds(R_IV, C * D), :]  # (C*D,128) lanes 0..D-1 = inverse covariances
        lgc = p_ref[pl.ds(R_LC, 1), :]      # (1,128) lanes 0..C-1 = log norm consts

        w1c = [w1t[:, d:d + 1] for d in range(D)]            # (H,1) columns
        w2c = [w2a[:, d:d + 1] for d in range(D)]            # (H,1) columns
        ctrc = w2a[:, D:D + 1]                                # (H,1) trace coefficients

        dlogp = jnp.zeros((1, BT), jnp.float32)

        # Fixed-step Euler CNF, fully unrolled.  Hot tensors are (H, BT)/(1, BT):
        # VPU broadcast-FMAs + XLU sublane reductions + EUP tanh, no MXU.
        for s in range(S):
            h = tbt[:, s:s + 1] + w1c[0] * x_rows[0]          # (H,1)*(1,BT) outer prod
            for d in range(1, D):
                h = h + w1c[d] * x_rows[d]
            a = jnp.tanh(h)                                   # (H, BT) on the EUP
            # exact trace of df/dx for a single hidden tanh layer
            tr = jnp.sum(ctrc * (1.0 - a * a), axis=0, keepdims=True)    # (1, BT)
            for d in range(D):
                fx_d = jnp.sum(w2c[d] * a, axis=0, keepdims=True)        # (1, BT)
                x_rows[d] = x_rows[d] + fx_d + b2r[:, d:d + 1]           # dt folded in
            dlogp = dlogp - tr                                           # dt folded in

        # Per-label multivariate Gaussian log-density (batch still on lanes).
        # All per-class / per-feature constants are (1,1) broadcast scalars.
        logp = jnp.zeros((1, BT), jnp.float32)
        for c in range(C):
            diff = [x_rows[e] - mus[c:c + 1, e:e + 1] for e in range(D)]
            quad = jnp.zeros((1, BT), jnp.float32)
            for d in range(D):
                y_d = ivs[c * D + d:c * D + d + 1, 0:1] * diff[0]
                for e in range(1, D):
                    y_d = y_d + ivs[c * D + d:c * D + d + 1, e:e + 1] * diff[e]
                quad = quad + diff[d] * y_d
            lp_c = -0.5 * quad - lgc[:, c:c + 1]
            mask = (lab == float(c)).astype(jnp.float32)      # one-hot built in-kernel
            logp = logp + mask * lp_c

        # Assemble the whole (OUT_ROWS, BT) slab in registers -> ONE unmasked store.
        row_id = lax.broadcasted_iota(jnp.int32, (OUT_ROWS, BT), 0)
        slab = jnp.zeros((OUT_ROWS, BT), jnp.float32)
        for d in range(D):
            slab = jnp.where(row_id == d, x_rows[d], slab)
        slab = jnp.where(row_id == D, logp, slab)
        slab = jnp.where(row_id == D + 1, -dlogp, slab)
        out_ref[...] = slab

    return kernel


def ffjord_forward(x, label, W1, wt, b1, W2, b2, means, invcov, dets,
                   *, batch_tile=None):
    B, D = x.shape
    H = W1.shape[1]
    C = means.shape[0]
    S = N_STEPS
    dt = T_FINAL / S

    # guards for the packed-slab layout (would otherwise silently read padding)
    assert D + 1 <= _LANES, "D must fit within 128 lanes of the packed param slab"
    assert S <= _LANES and C <= _LANES, "N_STEPS and num classes must fit in 128 lanes"

    # --- one-time host-side parameter prep (transposed orientation) -----------
    ctr = jnp.diagonal(jnp.dot(W2, W1))                          # (H,) = diag(W2@W1)
    ts = (jnp.arange(S, dtype=jnp.float32) * dt)[:, None]        # (S, 1)
    tbias = ts * wt.reshape(1, H) + b1.reshape(1, H)             # (S, H)
    logc = jnp.log(((2.0 * jnp.pi) ** (D / 2.0)) * jnp.sqrt(dets))  # (C,)

    lay = _param_layout(D, H, C, S)
    R = lay["rows"]
    params = jnp.zeros((R, _LANES), jnp.float32)
    params = params.at[lay["w1t"]:lay["w1t"] + H, :D].set(W1.T.astype(jnp.float32))
    params = params.at[lay["tbt"]:lay["tbt"] + H, :S].set(tbias.T.astype(jnp.float32))
    params = params.at[lay["w2a"]:lay["w2a"] + H, :D].set((dt * W2).astype(jnp.float32))
    params = params.at[lay["w2a"]:lay["w2a"] + H, D].set((dt * ctr).astype(jnp.float32))
    params = params.at[lay["b2"], :D].set((dt * b2).astype(jnp.float32))
    params = params.at[lay["mu"]:lay["mu"] + C, :D].set(means.astype(jnp.float32))
    params = params.at[lay["inv"]:lay["inv"] + C * D, :D].set(
        invcov.astype(jnp.float32).reshape(C * D, D))
    params = params.at[lay["logc"], :C].set(logc.astype(jnp.float32))

    # --- batch tiling: batch is the LANE axis, tile must be a multiple of 128 --
    if batch_tile is None:
        bt = 1024                                   # large tiles amortize grid overhead
        while bt > _LANES and _round_up(max(B, 1), bt) // bt < 2:
            bt //= 2                                # keep >= 2 tiles for v7x megacore
        batch_tile = bt
    BT = max(_LANES, _round_up(batch_tile, _LANES))
    B_pad = _round_up(max(B, 1), BT)
    n_tiles = B_pad // BT

    IN_ROWS = _round_up(D + 1, _SUB)
    OUT_ROWS = _round_up(D + 2, _SUB)

    # one lane-dense input slab: rows 0..D-1 = x^T, row D = label (as float32)
    xin = jnp.zeros((IN_ROWS, B_pad), jnp.float32)
    xin = xin.at[:D, :B].set(jnp.asarray(x, jnp.float32).T)
    xin = xin.at[D, :B].set(label.astype(jnp.float32))

    kernel = _make_kernel(D, H, C, S, BT, OUT_ROWS, lay)

    cost = pl.CostEstimate(
        flops=int(B_pad * (S * (4 * D * H + 6 * H + 4 * D) + C * (2 * D * D + 6 * D))),
        transcendentals=int(B_pad * S * H),
        bytes_accessed=int(4 * ((IN_ROWS + OUT_ROWS) * B_pad + n_tiles * R * _LANES)),
    )

    out = pl.pallas_call(
        kernel,
        out_shape=jax.ShapeDtypeStruct((OUT_ROWS, B_pad), jnp.float32),
        grid=(n_tiles,),
        in_specs=[
            pl.BlockSpec((IN_ROWS, BT), lambda i: (0, i)),   # [x^T | label] slab
            pl.BlockSpec((R, _LANES), lambda i: (0, 0)),     # packed params (resident)
        ],
        out_specs=pl.BlockSpec((OUT_ROWS, BT), lambda i: (0, i)),
        compiler_params=pltpu.CompilerParams(
            dimension_semantics=("parallel",),
            vmem_limit_bytes=32 * 1024 * 1024,   # budget against v7x's 64 MiB / TC
        ),
        cost_estimate=cost,
    )(xin, params)

    z = out[:D, :B].T                       # (B, D)
    logp = out[D, :B]                       # (B,)
    ndlogp = out[D + 1, :B].reshape(B, 1)   # (B, 1) = -delta_logp

    # distloss depends only on `means` -> hoisted out of the kernel (plain JAX)
    d2 = jnp.sum((means[:, None, :] - means[None, :, :]) ** 2, axis=-1)
    distloss = jnp.log(1.0 + jnp.sqrt(jnp.maximum(d2, 0.0)).mean())

    # match torch return: (log_p (B,), distloss scalar, -delta_logp (B,1), z (B,D))
    return logp, distloss, ndlogp, z


def ffjord_reference(x, label, W1, wt, b1, W2, b2, means, invcov, dets):
    """Pure-JAX reference mirroring the kernel math (for validation)."""
    B, D = x.shape
    H = W1.shape[1]
    dt = T_FINAL / N_STEPS
    ctr = jnp.diagonal(jnp.dot(W2, W1)).reshape(H, 1)
    z = x
    dlogp = jnp.zeros((B, 1), jnp.float32)
    for i in range(N_STEPS):
        t = i * dt
        a = jnp.tanh(z @ W1 + t * wt.reshape(1, H) + b1.reshape(1, H))
        fx = a @ W2 + b2.reshape(1, D)
        tr = (1.0 - a * a) @ ctr
        z = z + dt * fx
        dlogp = dlogp - dt * tr
    logc = jnp.log(((2.0 * jnp.pi) ** (D / 2.0)) * jnp.sqrt(dets))
    diff = z[:, None, :] - means[None, :, :]                        # (B, C, D)
    quad = jnp.einsum('bcd,cde,bce->bc', diff, invcov, diff)
    logps = -0.5 * quad - logc[None, :]
    logp = jnp.take_along_axis(logps, label[:, None], axis=1)[:, 0]
    pd = jnp.sqrt(jnp.maximum(
        jnp.sum((means[:, None, :] - means[None, :, :]) ** 2, -1), 0.0))
    dist = jnp.log(1.0 + pd.mean())
    return logp, dist, -dlogp, z


if __name__ == "__main__":
    key = jax.random.PRNGKey(0)
    B, D, H, C = 256, 2, 32, 3

    k = jax.random.split(key, 8)
    x = jax.random.normal(k[0], (B, D), jnp.float32)
    label = jax.random.randint(k[1], (B,), 0, C)
    W1 = 0.3 * jax.random.normal(k[2], (D, H), jnp.float32)
    wt = 0.1 * jax.random.normal(k[3], (H,), jnp.float32)
    b1 = jnp.zeros((H,), jnp.float32)
    W2 = 0.3 * jax.random.normal(k[4], (H, D), jnp.float32)
    b2 = jnp.zeros((D,), jnp.float32)

    # Gaussian params: random means, dense SPD covariances V diag(eig) V^T
    means = 2.0 * jax.random.normal(k[5], (C, D), jnp.float32)
    eigvals = 0.5 + jax.random.uniform(k[6], (C, D), jnp.float32)   # > 0
    Q, _ = jnp.linalg.qr(jax.random.normal(k[7], (C, D, D), jnp.float32))
    invcov = jnp.einsum('cij,cj,ckj->cik', Q, 1.0 / eigvals, Q)     # (C, D, D)
    dets = jnp.prod(eigvals, axis=-1)                               # (C,)

    # default tiling -> BT=128 lanes, 2 parallel grid tiles (exercises megacore path)
    out = ffjord_forward(x, label, W1, wt, b1, W2, b2, means, invcov, dets)
    out = jax.block_until_ready(out)

    ref = ffjord_reference(x, label, W1, wt, b1, W2, b2, means, invcov, dets)
    for o, r in zip(out, ref):
        assert jnp.allclose(o, r, rtol=2e-4, atol=2e-4), (o, r)

    print("KERNEL_OK")
</pallas_src>

<mosaic_0001>
module attributes {stable_mosaic.version = 11 : i64} {
  func.func @kernel(%arg0: i32, %arg1: memref<8x128xf32, #tpu.memory_space<vmem>>, %arg2: memref<128x128xf32, #tpu.memory_space<vmem>>, %arg3: memref<8x128xf32, #tpu.memory_space<vmem>>) attributes {dimension_semantics = [#tpu.dimension_semantics<parallel>], iteration_bounds = array<i64: 2>, scalar_prefetch = 0 : i64, scratch_operands = 0 : i64, tpu.core_type = #tpu.core_type<tc>, window_params = [{transform_indices = @transform_0, window_bounds = array<i64: 8, 128>}, {pipeline_mode = #tpu.pipeline_mode<synchronous>, transform_indices = @transform_1, window_bounds = array<i64: 128, 128>}, {transform_indices = @transform_2, window_bounds = array<i64: 8, 128>}]} {
    %c0 = arith.constant 0 : index
    %c0_0 = arith.constant 0 : index
    %0 = vector.load %arg1[%c0, %c0_0] : memref<8x128xf32, #tpu.memory_space<vmem>>, vector<1x128xf32>
    %c1 = arith.constant 1 : index
    %c0_1 = arith.constant 0 : index
    %1 = vector.load %arg1[%c1, %c0_1] : memref<8x128xf32, #tpu.memory_space<vmem>>, vector<1x128xf32>
    %c2 = arith.constant 2 : index
    %c0_2 = arith.constant 0 : index
    %2 = vector.load %arg1[%c2, %c0_2] : memref<8x128xf32, #tpu.memory_space<vmem>>, vector<1x128xf32>
    %c0_3 = arith.constant 0 : index
    %c0_4 = arith.constant 0 : index
    %3 = vector.load %arg2[%c0_3, %c0_4] : memref<128x128xf32, #tpu.memory_space<vmem>>, vector<32x128xf32>
    %c32 = arith.constant 32 : index
    %c0_5 = arith.constant 0 : index
    %4 = vector.load %arg2[%c32, %c0_5] : memref<128x128xf32, #tpu.memory_space<vmem>>, vector<32x128xf32>
    %c64 = arith.constant 64 : index
    %c0_6 = arith.constant 0 : index
    %5 = vector.load %arg2[%c64, %c0_6] : memref<128x128xf32, #tpu.memory_space<vmem>>, vector<32x128xf32>
    %c96 = arith.constant 96 : index
    %c0_7 = arith.constant 0 : index
    %6 = vector.load %arg2[%c96, %c0_7] : memref<128x128xf32, #tpu.memory_space<vmem>>, vector<1x128xf32>
    %c104 = arith.constant 104 : index
    %c0_8 = arith.constant 0 : index
    %7 = vector.load %arg2[%c104, %c0_8] : memref<128x128xf32, #tpu.memory_space<vmem>>, vector<3x128xf32>
    %c112 = arith.constant 112 : index
    %c0_9 = arith.constant 0 : index
    %8 = vector.load %arg2[%c112, %c0_9] : memref<128x128xf32, #tpu.memory_space<vmem>>, vector<6x128xf32>
    %c120 = arith.constant 120 : index
    %c0_10 = arith.constant 0 : index
    %9 = vector.load %arg2[%c120, %c0_10] : memref<128x128xf32, #tpu.memory_space<vmem>>, vector<1x128xf32>
    %10 = vector.extract_strided_slice %3 {offsets = [0, 0], sizes = [32, 1], strides = [1, 1]} : vector<32x128xf32> to vector<32x1xf32>
    %11 = vector.extract_strided_slice %3 {offsets = [0, 1], sizes = [32, 1], strides = [1, 1]} : vector<32x128xf32> to vector<32x1xf32>
    %12 = vector.extract_strided_slice %5 {offsets = [0, 0], sizes = [32, 1], strides = [1, 1]} : vector<32x128xf32> to vector<32x1xf32>
    %13 = vector.extract_strided_slice %5 {offsets = [0, 1], sizes = [32, 1], strides = [1, 1]} : vector<32x128xf32> to vector<32x1xf32>
    %14 = vector.extract_strided_slice %5 {offsets = [0, 2], sizes = [32, 1], strides = [1, 1]} : vector<32x128xf32> to vector<32x1xf32>
    %cst = arith.constant 0.000000e+00 : f32
    %15 = vector.broadcast %cst : f32 to vector<1x128xf32>
    %16 = vector.extract_strided_slice %4 {offsets = [0, 0], sizes = [32, 1], strides = [1, 1]} : vector<32x128xf32> to vector<32x1xf32>
    %17 = vector.broadcast %10 : vector<32x1xf32> to vector<32x128xf32>
    %18 = vector.broadcast %0 : vector<1x128xf32> to vector<32x128xf32>
    %19 = arith.mulf %17, %18 : vector<32x128xf32>
    %20 = vector.broadcast %16 : vector<32x1xf32> to vector<32x128xf32>
    %21 = arith.addf %20, %19 : vector<32x128xf32>
    %22 = vector.broadcast %11 : vector<32x1xf32> to vector<32x128xf32>
    %23 = vector.broadcast %1 : vector<1x128xf32> to vector<32x128xf32>
    %24 = arith.mulf %22, %23 : vector<32x128xf32>
    %25 = arith.addf %21, %24 : vector<32x128xf32>
    %26 = math.tanh %25 : vector<32x128xf32>
    %27 = arith.mulf %26, %26 : vector<32x128xf32>
    %cst_11 = arith.constant 1.000000e+00 : f32
    %28 = vector.broadcast %cst_11 : f32 to vector<32x128xf32>
    %29 = arith.subf %28, %27 : vector<32x128xf32>
    %30 = vector.broadcast %14 : vector<32x1xf32> to vector<32x128xf32>
    %31 = arith.mulf %30, %29 : vector<32x128xf32>
    %cst_12 = arith.constant dense<0.000000e+00> : vector<128xf32>
    %32 = vector.multi_reduction <add>, %31, %cst_12 [0] : vector<32x128xf32> to vector<128xf32>
    %33 = vector.shape_cast %32 : vector<128xf32> to vector<1x128xf32>
    %34 = vector.broadcast %12 : vector<32x1xf32> to vector<32x128xf32>
    %35 = arith.mulf %34, %26 : vector<32x128xf32>
    %cst_13 = arith.constant dense<0.000000e+00> : vector<128xf32>
    %36 = vector.multi_reduction <add>, %35, %cst_13 [0] : vector<32x128xf32> to vector<128xf32>
    %37 = vector.shape_cast %36 : vector<128xf32> to vector<1x128xf32>
    %38 = arith.addf %0, %37 : vector<1x128xf32>
    %39 = vector.extract_strided_slice %6 {offsets = [0, 0], sizes = [1, 1], strides = [1, 1]} : vector<1x128xf32> to vector<1x1xf32>
    %40 = vector.broadcast %39 : vector<1x1xf32> to vector<1x128xf32>
    %41 = arith.addf %38, %40 : vector<1x128xf32>
    %42 = vector.broadcast %13 : vector<32x1xf32> to vector<32x128xf32>
    %43 = arith.mulf %42, %26 : vector<32x128xf32>
    %cst_14 = arith.constant dense<0.000000e+00> : vector<128xf32>
    %44 = vector.multi_reduction <add>, %43, %cst_14 [0] : vector<32x128xf32> to vector<128xf32>
    %45 = vector.shape_cast %44 : vector<128xf32> to vector<1x128xf32>
    %46 = arith.addf %1, %45 : vector<1x128xf32>
    %47 = vector.extract_strided_slice %6 {offsets = [0, 1], sizes = [1, 1], strides = [1, 1]} : vector<1x128xf32> to vector<1x1xf32>
    %48 = vector.broadcast %47 : vector<1x1xf32> to vector<1x128xf32>
    %49 = arith.addf %46, %48 : vector<1x128xf32>
    %50 = arith.subf %15, %33 : vector<1x128xf32>
    %51 = vector.extract_strided_slice %4 {offsets = [0, 1], sizes = [32, 1], strides = [1, 1]} : vector<32x128xf32> to vector<32x1xf32>
    %52 = vector.broadcast %10 : vector<32x1xf32> to vector<32x128xf32>
    %53 = vector.broadcast %41 : vector<1x128xf32> to vector<32x128xf32>
    %54 = arith.mulf %52, %53 : vector<32x128xf32>
    %55 = vector.broadcast %51 : vector<32x1xf32> to vector<32x128xf32>
    %56 = arith.addf %55, %54 : vector<32x128xf32>
    %57 = vector.broadcast %11 : vector<32x1xf32> to vector<32x128xf32>
    %58 = vector.broadcast %49 : vector<1x128xf32> to vector<32x128xf32>
    %59 = arith.mulf %57, %58 : vector<32x128xf32>
    %60 = arith.addf %56, %59 : vector<32x128xf32>
    %61 = math.tanh %60 : vector<32x128xf32>
    %62 = arith.mulf %61, %61 : vector<32x128xf32>
    %cst_15 = arith.constant 1.000000e+00 : f32
    %63 = vector.broadcast %cst_15 : f32 to vector<32x128xf32>
    %64 = arith.subf %63, %62 : vector<32x128xf32>
    %65 = vector.broadcast %14 : vector<32x1xf32> to vector<32x128xf32>
    %66 = arith.mulf %65, %64 : vector<32x128xf32>
    %cst_16 = arith.constant dense<0.000000e+00> : vector<128xf32>
    %67 = vector.multi_reduction <add>, %66, %cst_16 [0] : vector<32x128xf32> to vector<128xf32>
    %68 = vector.shape_cast %67 : vector<128xf32> to vector<1x128xf32>
    %69 = vector.broadcast %12 : vector<32x1xf32> to vector<32x128xf32>
    %70 = arith.mulf %69, %61 : vector<32x128xf32>
    %cst_17 = arith.constant dense<0.000000e+00> : vector<128xf32>
    %71 = vector.multi_reduction <add>, %70, %cst_17 [0] : vector<32x128xf32> to vector<128xf32>
    %72 = vector.shape_cast %71 : vector<128xf32> to vector<1x128xf32>
    %73 = arith.addf %41, %72 : vector<1x128xf32>
    %74 = vector.extract_strided_slice %6 {offsets = [0, 0], sizes = [1, 1], strides = [1, 1]} : vector<1x128xf32> to vector<1x1xf32>
    %75 = vector.broadcast %74 : vector<1x1xf32> to vector<1x128xf32>
    %76 = arith.addf %73, %75 : vector<1x128xf32>
    %77 = vector.broadcast %13 : vector<32x1xf32> to vector<32x128xf32>
    %78 = arith.mulf %77, %61 : vector<32x128xf32>
    %cst_18 = arith.constant dense<0.000000e+00> : vector<128xf32>
    %79 = vector.multi_reduction <add>, %78, %cst_18 [0] : vector<32x128xf32> to vector<128xf32>
    %80 = vector.shape_cast %79 : vector<128xf32> to vector<1x128xf32>
    %81 = arith.addf %49, %80 : vector<1x128xf32>
    %82 = vector.extract_strided_slice %6 {offsets = [0, 1], sizes = [1, 1], strides = [1, 1]} : vector<1x128xf32> to vector<1x1xf32>
    %83 = vector.broadcast %82 : vector<1x1xf32> to vector<1x128xf32>
    %84 = arith.addf %81, %83 : vector<1x128xf32>
    %85 = arith.subf %50, %68 : vector<1x128xf32>
    %86 = vector.extract_strided_slice %4 {offsets = [0, 2], sizes = [32, 1], strides = [1, 1]} : vector<32x128xf32> to vector<32x1xf32>
    %87 = vector.broadcast %10 : vector<32x1xf32> to vector<32x128xf32>
    %88 = vector.broadcast %76 : vector<1x128xf32> to vector<32x128xf32>
    %89 = arith.mulf %87, %88 : vector<32x128xf32>
    %90 = vector.broadcast %86 : vector<32x1xf32> to vector<32x128xf32>
    %91 = arith.addf %90, %89 : vector<32x128xf32>
    %92 = vector.broadcast %11 : vector<32x1xf32> to vector<32x128xf32>
    %93 = vector.broadcast %84 : vector<1x128xf32> to vector<32x128xf32>
    %94 = arith.mulf %92, %93 : vector<32x128xf32>
    %95 = arith.addf %91, %94 : vector<32x128xf32>
    %96 = math.tanh %95 : vector<32x128xf32>
    %97 = arith.mulf %96, %96 : vector<32x128xf32>
    %cst_19 = arith.constant 1.000000e+00 : f32
    %98 = vector.broadcast %cst_19 : f32 to vector<32x128xf32>
    %99 = arith.subf %98, %97 : vector<32x128xf32>
    %100 = vector.broadcast %14 : vector<32x1xf32> to vector<32x128xf32>
    %101 = arith.mulf %100, %99 : vector<32x128xf32>
    %cst_20 = arith.constant dense<0.000000e+00> : vector<128xf32>
    %102 = vector.multi_reduction <add>, %101, %cst_20 [0] : vector<32x128xf32> to vector<128xf32>
    %103 = vector.shape_cast %102 : vector<128xf32> to vector<1x128xf32>
    %104 = vector.broadcast %12 : vector<32x1xf32> to vector<32x128xf32>
    %105 = arith.mulf %104, %96 : vector<32x128xf32>
    %cst_21 = arith.constant dense<0.000000e+00> : vector<128xf32>
    %106 = vector.multi_reduction <add>, %105, %cst_21 [0] : vector<32x128xf32> to vector<128xf32>
    %107 = vector.shape_cast %106 : vector<128xf32> to vector<1x128xf32>
    %108 = arith.addf %76, %107 : vector<1x128xf32>
    %109 = vector.extract_strided_slice %6 {offsets = [0, 0], sizes = [1, 1], strides = [1, 1]} : vector<1x128xf32> to vector<1x1xf32>
    %110 = vector.broadcast %109 : vector<1x1xf32> to vector<1x128xf32>
    %111 = arith.addf %108, %110 : vector<1x128xf32>
    %112 = vector.broadcast %13 : vector<32x1xf32> to vector<32x128xf32>
    %113 = arith.mulf %112, %96 : vector<32x128xf32>
    %cst_22 = arith.constant dense<0.000000e+00> : vector<128xf32>
    %114 = vector.multi_reduction <add>, %113, %cst_22 [0] : vector<32x128xf32> to vector<128xf32>
    %115 = vector.shape_cast %114 : vector<128xf32> to vector<1x128xf32>
    %116 = arith.addf %84, %115 : vector<1x128xf32>
    %117 = vector.extract_strided_slice %6 {offsets = [0, 1], sizes = [1, 1], strides = [1, 1]} : vector<1x128xf32> to vector<1x1xf32>
    %118 = vector.broadcast %117 : vector<1x1xf32> to vector<1x128xf32>
    %119 = arith.addf %116, %118 : vector<1x128xf32>
    %120 = arith.subf %85, %103 : vector<1x128xf32>
    %121 = vector.extract_strided_slice %4 {offsets = [0, 3], sizes = [32, 1], strides = [1, 1]} : vector<32x128xf32> to vector<32x1xf32>
    %122 = vector.broadcast %10 : vector<32x1xf32> to vector<32x128xf32>
    %123 = vector.broadcast %111 : vector<1x128xf32> to vector<32x128xf32>
    %124 = arith.mulf %122, %123 : vector<32x128xf32>
    %125 = vector.broadcast %121 : vector<32x1xf32> to vector<32x128xf32>
    %126 = arith.addf %125, %124 : vector<32x128xf32>
    %127 = vector.broadcast %11 : vector<32x1xf32> to vector<32x128xf32>
    %128 = vector.broadcast %119 : vector<1x128xf32> to vector<32x128xf32>
    %129 = arith.mulf %127, %128 : vector<32x128xf32>
    %130 = arith.addf %126, %129 : vector<32x128xf32>
    %131 = math.tanh %130 : vector<32x128xf32>
    %132 = arith.mulf %131, %131 : vector<32x128xf32>
    %cst_23 = arith.constant 1.000000e+00 : f32
    %133 = vector.broadcast %cst_23 : f32 to vector<32x128xf32>
    %134 = arith.subf %133, %132 : vector<32x128xf32>
    %135 = vector.broadcast %14 : vector<32x1xf32> to vector<32x128xf32>
    %136 = arith.mulf %135, %134 : vector<32x128xf32>
    %cst_24 = arith.constant dense<0.000000e+00> : vector<128xf32>
    %137 = vector.multi_reduction <add>, %136, %cst_24 [0] : vector<32x128xf32> to vector<128xf32>
    %138 = vector.shape_cast %137 : vector<128xf32> to vector<1x128xf32>
    %139 = vector.broadcast %12 : vector<32x1xf32> to vector<32x128xf32>
    %140 = arith.mulf %139, %131 : vector<32x128xf32>
    %cst_25 = arith.constant dense<0.000000e+00> : vector<128xf32>
    %141 = vector.multi_reduction <add>, %140, %cst_25 [0] : vector<32x128xf32> to vector<128xf32>
    %142 = vector.shape_cast %141 : vector<128xf32> to vector<1x128xf32>
    %143 = arith.addf %111, %142 : vector<1x128xf32>
    %144 = vector.extract_strided_slice %6 {offsets = [0, 0], sizes = [1, 1], strides = [1, 1]} : vector<1x128xf32> to vector<1x1xf32>
    %145 = vector.broadcast %144 : vector<1x1xf32> to vector<1x128xf32>
    %146 = arith.addf %143, %145 : vector<1x128xf32>
    %147 = vector.broadcast %13 : vector<32x1xf32> to vector<32x128xf32>
    %148 = arith.mulf %147, %131 : vector<32x128xf32>
    %cst_26 = arith.constant dense<0.000000e+00> : vector<128xf32>
    %149 = vector.multi_reduction <add>, %148, %cst_26 [0] : vector<32x128xf32> to vector<128xf32>
    %150 = vector.shape_cast %149 : vector<128xf32> to vector<1x128xf32>
    %151 = arith.addf %119, %150 : vector<1x128xf32>
    %152 = vector.extract_strided_slice %6 {offsets = [0, 1], sizes = [1, 1], strides = [1, 1]} : vector<1x128xf32> to vector<1x1xf32>
    %153 = vector.broadcast %152 : vector<1x1xf32> to vector<1x128xf32>
    %154 = arith.addf %151, %153 : vector<1x128xf32>
    %155 = arith.subf %120, %138 : vector<1x128xf32>
    %156 = vector.extract_strided_slice %4 {offsets = [0, 4], sizes = [32, 1], strides = [1, 1]} : vector<32x128xf32> to vector<32x1xf32>
    %157 = vector.broadcast %10 : vector<32x1xf32> to vector<32x128xf32>
    %158 = vector.broadcast %146 : vector<1x128xf32> to vector<32x128xf32>
    %159 = arith.mulf %157, %158 : vector<32x128xf32>
    %160 = vector.broadcast %156 : vector<32x1xf32> to vector<32x128xf32>
    %161 = arith.addf %160, %159 : vector<32x128xf32>
    %162 = vector.broadcast %11 : vector<32x1xf32> to vector<32x128xf32>
    %163 = vector.broadcast %154 : vector<1x128xf32> to vector<32x128xf32>
    %164 = arith.mulf %162, %163 : vector<32x128xf32>
    %165 = arith.addf %161, %164 : vector<32x128xf32>
    %166 = math.tanh %165 : vector<32x128xf32>
    %167 = arith.mulf %166, %166 : vector<32x128xf32>
    %cst_27 = arith.constant 1.000000e+00 : f32
    %168 = vector.broadcast %cst_27 : f32 to vector<32x128xf32>
    %169 = arith.subf %168, %167 : vector<32x128xf32>
    %170 = vector.broadcast %14 : vector<32x1xf32> to vector<32x128xf32>
    %171 = arith.mulf %170, %169 : vector<32x128xf32>
    %cst_28 = arith.constant dense<0.000000e+00> : vector<128xf32>
    %172 = vector.multi_reduction <add>, %171, %cst_28 [0] : vector<32x128xf32> to vector<128xf32>
    %173 = vector.shape_cast %172 : vector<128xf32> to vector<1x128xf32>
    %174 = vector.broadcast %12 : vector<32x1xf32> to vector<32x128xf32>
    %175 = arith.mulf %174, %166 : vector<32x128xf32>
    %cst_29 = arith.constant dense<0.000000e+00> : vector<128xf32>
    %176 = vector.multi_reduction <add>, %175, %cst_29 [0] : vector<32x128xf32> to vector<128xf32>
    %177 = vector.shape_cast %176 : vector<128xf32> to vector<1x128xf32>
    %178 = arith.addf %146, %177 : vector<1x128xf32>
    %179 = vector.extract_strided_slice %6 {offsets = [0, 0], sizes = [1, 1], strides = [1, 1]} : vector<1x128xf32> to vector<1x1xf32>
    %180 = vector.broadcast %179 : vector<1x1xf32> to vector<1x128xf32>
    %181 = arith.addf %178, %180 : vector<1x128xf32>
    %182 = vector.broadcast %13 : vector<32x1xf32> to vector<32x128xf32>
    %183 = arith.mulf %182, %166 : vector<32x128xf32>
    %cst_30 = arith.constant dense<0.000000e+00> : vector<128xf32>
    %184 = vector.multi_reduction <add>, %183, %cst_30 [0] : vector<32x128xf32> to vector<128xf32>
    %185 = vector.shape_cast %184 : vector<128xf32> to vector<1x128xf32>
    %186 = arith.addf %154, %185 : vector<1x128xf32>
    %187 = vector.extract_strided_slice %6 {offsets = [0, 1], sizes = [1, 1], strides = [1, 1]} : vector<1x128xf32> to vector<1x1xf32>
    %188 = vector.broadcast %187 : vector<1x1xf32> to vector<1x128xf32>
    %189 = arith.addf %186, %188 : vector<1x128xf32>
    %190 = arith.subf %155, %173 : vector<1x128xf32>
    %191 = vector.extract_strided_slice %4 {offsets = [0, 5], sizes = [32, 1], strides = [1, 1]} : vector<32x128xf32> to vector<32x1xf32>
    %192 = vector.broadcast %10 : vector<32x1xf32> to vector<32x128xf32>
    %193 = vector.broadcast %181 : vector<1x128xf32> to vector<32x128xf32>
    %194 = arith.mulf %192, %193 : vector<32x128xf32>
    %195 = vector.broadcast %191 : vector<32x1xf32> to vector<32x128xf32>
    %196 = arith.addf %195, %194 : vector<32x128xf32>
    %197 = vector.broadcast %11 : vector<32x1xf32> to vector<32x128xf32>
    %198 = vector.broadcast %189 : vector<1x128xf32> to vector<32x128xf32>
    %199 = arith.mulf %197, %198 : vector<32x128xf32>
    %200 = arith.addf %196, %199 : vector<32x128xf32>
    %201 = math.tanh %200 : vector<32x128xf32>
    %202 = arith.mulf %201, %201 : vector<32x128xf32>
    %cst_31 = arith.constant 1.000000e+00 : f32
    %203 = vector.broadcast %cst_31 : f32 to vector<32x128xf32>
    %204 = arith.subf %203, %202 : vector<32x128xf32>
    %205 = vector.broadcast %14 : vector<32x1xf32> to vector<32x128xf32>
    %206 = arith.mulf %205, %204 : vector<32x128xf32>
    %cst_32 = arith.constant dense<0.000000e+00> : vector<128xf32>
    %207 = vector.multi_reduction <add>, %206, %cst_32 [0] : vector<32x128xf32> to vector<128xf32>
    %208 = vector.shape_cast %207 : vector<128xf32> to vector<1x128xf32>
    %209 = vector.broadcast %12 : vector<32x1xf32> to vector<32x128xf32>
    %210 = arith.mulf %209, %201 : vector<32x128xf32>
    %cst_33 = arith.constant dense<0.000000e+00> : vector<128xf32>
    %211 = vector.multi_reduction <add>, %210, %cst_33 [0] : vector<32x128xf32> to vector<128xf32>
    %212 = vector.shape_cast %211 : vector<128xf32> to vector<1x128xf32>
    %213 = arith.addf %181, %212 : vector<1x128xf32>
    %214 = vector.extract_strided_slice %6 {offsets = [0, 0], sizes = [1, 1], strides = [1, 1]} : vector<1x128xf32> to vector<1x1xf32>
    %215 = vector.broadcast %214 : vector<1x1xf32> to vector<1x128xf32>
    %216 = arith.addf %213, %215 : vector<1x128xf32>
    %217 = vector.broadcast %13 : vector<32x1xf32> to vector<32x128xf32>
    %218 = arith.mulf %217, %201 : vector<32x128xf32>
    %cst_34 = arith.constant dense<0.000000e+00> : vector<128xf32>
    %219 = vector.multi_reduction <add>, %218, %cst_34 [0] : vector<32x128xf32> to vector<128xf32>
    %220 = vector.shape_cast %219 : vector<128xf32> to vector<1x128xf32>
    %221 = arith.addf %189, %220 : vector<1x128xf32>
    %222 = vector.extract_strided_slice %6 {offsets = [0, 1], sizes = [1, 1], strides = [1, 1]} : vector<1x128xf32> to vector<1x1xf32>
    %223 = vector.broadcast %222 : vector<1x1xf32> to vector<1x128xf32>
    %224 = arith.addf %221, %223 : vector<1x128xf32>
    %225 = arith.subf %190, %208 : vector<1x128xf32>
    %226 = vector.extract_strided_slice %4 {offsets = [0, 6], sizes = [32, 1], strides = [1, 1]} : vector<32x128xf32> to vector<32x1xf32>
    %227 = vector.broadcast %10 : vector<32x1xf32> to vector<32x128xf32>
    %228 = vector.broadcast %216 : vector<1x128xf32> to vector<32x128xf32>
    %229 = arith.mulf %227, %228 : vector<32x128xf32>
    %230 = vector.broadcast %226 : vector<32x1xf32> to vector<32x128xf32>
    %231 = arith.addf %230, %229 : vector<32x128xf32>
    %232 = vector.broadcast %11 : vector<32x1xf32> to vector<32x128xf32>
    %233 = vector.broadcast %224 : vector<1x128xf32> to vector<32x128xf32>
    %234 = arith.mulf %232, %233 : vector<32x128xf32>
    %235 = arith.addf %231, %234 : vector<32x128xf32>
    %236 = math.tanh %235 : vector<32x128xf32>
    %237 = arith.mulf %236, %236 : vector<32x128xf32>
    %cst_35 = arith.constant 1.000000e+00 : f32
    %238 = vector.broadcast %cst_35 : f32 to vector<32x128xf32>
    %239 = arith.subf %238, %237 : vector<32x128xf32>
    %240 = vector.broadcast %14 : vector<32x1xf32> to vector<32x128xf32>
    %241 = arith.mulf %240, %239 : vector<32x128xf32>
    %cst_36 = arith.constant dense<0.000000e+00> : vector<128xf32>
    %242 = vector.multi_reduction <add>, %241, %cst_36 [0] : vector<32x128xf32> to vector<128xf32>
    %243 = vector.shape_cast %242 : vector<128xf32> to vector<1x128xf32>
    %244 = vector.broadcast %12 : vector<32x1xf32> to vector<32x128xf32>
    %245 = arith.mulf %244, %236 : vector<32x128xf32>
    %cst_37 = arith.constant dense<0.000000e+00> : vector<128xf32>
    %246 = vector.multi_reduction <add>, %245, %cst_37 [0] : vector<32x128xf32> to vector<128xf32>
    %247 = vector.shape_cast %246 : vector<128xf32> to vector<1x128xf32>
    %248 = arith.addf %216, %247 : vector<1x128xf32>
    %249 = vector.extract_strided_slice %6 {offsets = [0, 0], sizes = [1, 1], strides = [1, 1]} : vector<1x128xf32> to vector<1x1xf32>
    %250 = vector.broadcast %249 : vector<1x1xf32> to vector<1x128xf32>
    %251 = arith.addf %248, %250 : vector<1x128xf32>
    %252 = vector.broadcast %13 : vector<32x1xf32> to vector<32x128xf32>
    %253 = arith.mulf %252, %236 : vector<32x128xf32>
    %cst_38 = arith.constant dense<0.000000e+00> : vector<128xf32>
    %254 = vector.multi_reduction <add>, %253, %cst_38 [0] : vector<32x128xf32> to vector<128xf32>
    %255 = vector.shape_cast %254 : vector<128xf32> to vector<1x128xf32>
    %256 = arith.addf %224, %255 : vector<1x128xf32>
    %257 = vector.extract_strided_slice %6 {offsets = [0, 1], sizes = [1, 1], strides = [1, 1]} : vector<1x128xf32> to vector<1x1xf32>
    %258 = vector.broadcast %257 : vector<1x1xf32> to vector<1x128xf32>
    %259 = arith.addf %256, %258 : vector<1x128xf32>
    %260 = arith.subf %225, %243 : vector<1x128xf32>
    %261 = vector.extract_strided_slice %4 {offsets = [0, 7], sizes = [32, 1], strides = [1, 1]} : vector<32x128xf32> to vector<32x1xf32>
    %262 = vector.broadcast %10 : vector<32x1xf32> to vector<32x128xf32>
    %263 = vector.broadcast %251 : vector<1x128xf32> to vector<32x128xf32>
    %264 = arith.mulf %262, %263 : vector<32x128xf32>
    %265 = vector.broadcast %261 : vector<32x1xf32> to vector<32x128xf32>
    %266 = arith.addf %265, %264 : vector<32x128xf32>
    %267 = vector.broadcast %11 : vector<32x1xf32> to vector<32x128xf32>
    %268 = vector.broadcast %259 : vector<1x128xf32> to vector<32x128xf32>
    %269 = arith.mulf %267, %268 : vector<32x128xf32>
    %270 = arith.addf %266, %269 : vector<32x128xf32>
    %271 = math.tanh %270 : vector<32x128xf32>
    %272 = arith.mulf %271, %271 : vector<32x128xf32>
    %cst_39 = arith.constant 1.000000e+00 : f32
    %273 = vector.broadcast %cst_39 : f32 to vector<32x128xf32>
    %274 = arith.subf %273, %272 : vector<32x128xf32>
    %275 = vector.broadcast %14 : vector<32x1xf32> to vector<32x128xf32>
    %276 = arith.mulf %275, %274 : vector<32x128xf32>
    %cst_40 = arith.constant dense<0.000000e+00> : vector<128xf32>
    %277 = vector.multi_reduction <add>, %276, %cst_40 [0] : vector<32x128xf32> to vector<128xf32>
    %278 = vector.shape_cast %277 : vector<128xf32> to vector<1x128xf32>
    %279 = vector.broadcast %12 : vector<32x1xf32> to vector<32x128xf32>
    %280 = arith.mulf %279, %271 : vector<32x128xf32>
    %cst_41 = arith.constant dense<0.000000e+00> : vector<128xf32>
    %281 = vector.multi_reduction <add>, %280, %cst_41 [0] : vector<32x128xf32> to vector<128xf32>
    %282 = vector.shape_cast %281 : vector<128xf32> to vector<1x128xf32>
    %283 = arith.addf %251, %282 : vector<1x128xf32>
    %284 = vector.extract_strided_slice %6 {offsets = [0, 0], sizes = [1, 1], strides = [1, 1]} : vector<1x128xf32> to vector<1x1xf32>
    %285 = vector.broadcast %284 : vector<1x1xf32> to vector<1x128xf32>
    %286 = arith.addf %283, %285 : vector<1x128xf32>
    %287 = vector.broadcast %13 : vector<32x1xf32> to vector<32x128xf32>
    %288 = arith.mulf %287, %271 : vector<32x128xf32>
    %cst_42 = arith.constant dense<0.000000e+00> : vector<128xf32>
    %289 = vector.multi_reduction <add>, %288, %cst_42 [0] : vector<32x128xf32> to vector<128xf32>
    %290 = vector.shape_cast %289 : vector<128xf32> to vector<1x128xf32>
    %291 = arith.addf %259, %290 : vector<1x128xf32>
    %292 = vector.extract_strided_slice %6 {offsets = [0, 1], sizes = [1, 1], strides = [1, 1]} : vector<1x128xf32> to vector<1x1xf32>
    %293 = vector.broadcast %292 : vector<1x1xf32> to vector<1x128xf32>
    %294 = arith.addf %291, %293 : vector<1x128xf32>
    %295 = arith.subf %260, %278 : vector<1x128xf32>
    %cst_43 = arith.constant 0.000000e+00 : f32
    %296 = vector.broadcast %cst_43 : f32 to vector<1x128xf32>
    %297 = vector.extract_strided_slice %7 {offsets = [0, 0], sizes = [1, 1], strides = [1, 1]} : vector<3x128xf32> to vector<1x1xf32>
    %298 = vector.broadcast %297 : vector<1x1xf32> to vector<1x128xf32>
    %299 = arith.subf %286, %298 : vector<1x128xf32>
    %300 = vector.extract_strided_slice %7 {offsets = [0, 1], sizes = [1, 1], strides = [1, 1]} : vector<3x128xf32> to vector<1x1xf32>
    %301 = vector.broadcast %300 : vector<1x1xf32> to vector<1x128xf32>
    %302 = arith.subf %294, %301 : vector<1x128xf32>
    %cst_44 = arith.constant 0.000000e+00 : f32
    %303 = vector.broadcast %cst_44 : f32 to vector<1x128xf32>
    %304 = vector.extract_strided_slice %8 {offsets = [0, 0], sizes = [1, 1], strides = [1, 1]} : vector<6x128xf32> to vector<1x1xf32>
    %305 = vector.broadcast %304 : vector<1x1xf32> to vector<1x128xf32>
    %306 = arith.mulf %305, %299 : vector<1x128xf32>
    %307 = vector.extract_strided_slice %8 {offsets = [0, 1], sizes = [1, 1], strides = [1, 1]} : vector<6x128xf32> to vector<1x1xf32>
    %308 = vector.broadcast %307 : vector<1x1xf32> to vector<1x128xf32>
    %309 = arith.mulf %308, %302 : vector<1x128xf32>
    %310 = arith.addf %306, %309 : vector<1x128xf32>
    %311 = arith.mulf %299, %310 : vector<1x128xf32>
    %312 = arith.addf %303, %311 : vector<1x128xf32>
    %313 = vector.extract_strided_slice %8 {offsets = [1, 0], sizes = [1, 1], strides = [1, 1]} : vector<6x128xf32> to vector<1x1xf32>
    %314 = vector.broadcast %313 : vector<1x1xf32> to vector<1x128xf32>
    %315 = arith.mulf %314, %299 : vector<1x128xf32>
    %316 = vector.extract_strided_slice %8 {offsets = [1, 1], sizes = [1, 1], strides = [1, 1]} : vector<6x128xf32> to vector<1x1xf32>
    %317 = vector.broadcast %316 : vector<1x1xf32> to vector<1x128xf32>
    %318 = arith.mulf %317, %302 : vector<1x128xf32>
    %319 = arith.addf %315, %318 : vector<1x128xf32>
    %320 = arith.mulf %302, %319 : vector<1x128xf32>
    %321 = arith.addf %312, %320 : vector<1x128xf32>
    %cst_45 = arith.constant -5.000000e-01 : f32
    %322 = vector.broadcast %cst_45 : f32 to vector<1x128xf32>
    %323 = arith.mulf %322, %321 : vector<1x128xf32>
    %324 = vector.extract_strided_slice %9 {offsets = [0, 0], sizes = [1, 1], strides = [1, 1]} : vector<1x128xf32> to vector<1x1xf32>
    %325 = vector.broadcast %324 : vector<1x1xf32> to vector<1x128xf32>
    %326 = arith.subf %323, %325 : vector<1x128xf32>
    %cst_46 = arith.constant 0.000000e+00 : f32
    %327 = vector.broadcast %cst_46 : f32 to vector<1x128xf32>
    %328 = arith.cmpf oeq, %2, %327 : vector<1x128xf32>
    %329 = arith.extui %328 : vector<1x128xi1> to vector<1x128xi32>
    %330 = arith.sitofp %329 : vector<1x128xi32> to vector<1x128xf32>
    %331 = arith.mulf %330, %326 : vector<1x128xf32>
    %332 = arith.addf %296, %331 : vector<1x128xf32>
    %333 = vector.extract_strided_slice %7 {offsets = [1, 0], sizes = [1, 1], strides = [1, 1]} : vector<3x128xf32> to vector<1x1xf32>
    %334 = vector.broadcast %333 : vector<1x1xf32> to vector<1x128xf32>
    %335 = arith.subf %286, %334 : vector<1x128xf32>
    %336 = vector.extract_strided_slice %7 {offsets = [1, 1], sizes = [1, 1], strides = [1, 1]} : vector<3x128xf32> to vector<1x1xf32>
    %337 = vector.broadcast %336 : vector<1x1xf32> to vector<1x128xf32>
    %338 = arith.subf %294, %337 : vector<1x128xf32>
    %cst_47 = arith.constant 0.000000e+00 : f32
    %339 = vector.broadcast %cst_47 : f32 to vector<1x128xf32>
    %340 = vector.extract_strided_slice %8 {offsets = [2, 0], sizes = [1, 1], strides = [1, 1]} : vector<6x128xf32> to vector<1x1xf32>
    %341 = vector.broadcast %340 : vector<1x1xf32> to vector<1x128xf32>
    %342 = arith.mulf %341, %335 : vector<1x128xf32>
    %343 = vector.extract_strided_slice %8 {offsets = [2, 1], sizes = [1, 1], strides = [1, 1]} : vector<6x128xf32> to vector<1x1xf32>
    %344 = vector.broadcast %343 : vector<1x1xf32> to vector<1x128xf32>
    %345 = arith.mulf %344, %338 : vector<1x128xf32>
    %346 = arith.addf %342, %345 : vector<1x128xf32>
    %347 = arith.mulf %335, %346 : vector<1x128xf32>
    %348 = arith.addf %339, %347 : vector<1x128xf32>
    %349 = vector.extract_strided_slice %8 {offsets = [3, 0], sizes = [1, 1], strides = [1, 1]} : vector<6x128xf32> to vector<1x1xf32>
    %350 = vector.broadcast %349 : vector<1x1xf32> to vector<1x128xf32>
    %351 = arith.mulf %350, %335 : vector<1x128xf32>
    %352 = vector.extract_strided_slice %8 {offsets = [3, 1], sizes = [1, 1], strides = [1, 1]} : vector<6x128xf32> to vector<1x1xf32>
    %353 = vector.broadcast %352 : vector<1x1xf32> to vector<1x128xf32>
    %354 = arith.mulf %353, %338 : vector<1x128xf32>
    %355 = arith.addf %351, %354 : vector<1x128xf32>
    %356 = arith.mulf %338, %355 : vector<1x128xf32>
    %357 = arith.addf %348, %356 : vector<1x128xf32>
    %cst_48 = arith.constant -5.000000e-01 : f32
    %358 = vector.broadcast %cst_48 : f32 to vector<1x128xf32>
    %359 = arith.mulf %358, %357 : vector<1x128xf32>
    %360 = vector.extract_strided_slice %9 {offsets = [0, 1], sizes = [1, 1], strides = [1, 1]} : vector<1x128xf32> to vector<1x1xf32>
    %361 = vector.broadcast %360 : vector<1x1xf32> to vector<1x128xf32>
    %362 = arith.subf %359, %361 : vector<1x128xf32>
    %cst_49 = arith.constant 1.000000e+00 : f32
    %363 = vector.broadcast %cst_49 : f32 to vector<1x128xf32>
    %364 = arith.cmpf oeq, %2, %363 : vector<1x128xf32>
    %365 = arith.extui %364 : vector<1x128xi1> to vector<1x128xi32>
    %366 = arith.sitofp %365 : vector<1x128xi32> to vector<1x128xf32>
    %367 = arith.mulf %366, %362 : vector<1x128xf32>
    %368 = arith.addf %332, %367 : vector<1x128xf32>
    %369 = vector.extract_strided_slice %7 {offsets = [2, 0], sizes = [1, 1], strides = [1, 1]} : vector<3x128xf32> to vector<1x1xf32>
    %370 = vector.broadcast %369 : vector<1x1xf32> to vector<1x128xf32>
    %371 = arith.subf %286, %370 : vector<1x128xf32>
    %372 = vector.extract_strided_slice %7 {offsets = [2, 1], sizes = [1, 1], strides = [1, 1]} : vector<3x128xf32> to vector<1x1xf32>
    %373 = vector.broadcast %372 : vector<1x1xf32> to vector<1x128xf32>
    %374 = arith.subf %294, %373 : vector<1x128xf32>
    %cst_50 = arith.constant 0.000000e+00 : f32
    %375 = vector.broadcast %cst_50 : f32 to vector<1x128xf32>
    %376 = vector.extract_strided_slice %8 {offsets = [4, 0], sizes = [1, 1], strides = [1, 1]} : vector<6x128xf32> to vector<1x1xf32>
    %377 = vector.broadcast %376 : vector<1x1xf32> to vector<1x128xf32>
    %378 = arith.mulf %377, %371 : vector<1x128xf32>
    %379 = vector.extract_strided_slice %8 {offsets = [4, 1], sizes = [1, 1], strides = [1, 1]} : vector<6x128xf32> to vector<1x1xf32>
    %380 = vector.broadcast %379 : vector<1x1xf32> to vector<1x128xf32>
    %381 = arith.mulf %380, %374 : vector<1x128xf32>
    %382 = arith.addf %378, %381 : vector<1x128xf32>
    %383 = arith.mulf %371, %382 : vector<1x128xf32>
    %384 = arith.addf %375, %383 : vector<1x128xf32>
    %385 = vector.extract_strided_slice %8 {offsets = [5, 0], sizes = [1, 1], strides = [1, 1]} : vector<6x128xf32> to vector<1x1xf32>
    %386 = vector.broadcast %385 : vector<1x1xf32> to vector<1x128xf32>
    %387 = arith.mulf %386, %371 : vector<1x128xf32>
    %388 = vector.extract_strided_slice %8 {offsets = [5, 1], sizes = [1, 1], strides = [1, 1]} : vector<6x128xf32> to vector<1x1xf32>
    %389 = vector.broadcast %388 : vector<1x1xf32> to vector<1x128xf32>
    %390 = arith.mulf %389, %374 : vector<1x128xf32>
    %391 = arith.addf %387, %390 : vector<1x128xf32>
    %392 = arith.mulf %374, %391 : vector<1x128xf32>
    %393 = arith.addf %384, %392 : vector<1x128xf32>
    %cst_51 = arith.constant -5.000000e-01 : f32
    %394 = vector.broadcast %cst_51 : f32 to vector<1x128xf32>
    %395 = arith.mulf %394, %393 : vector<1x128xf32>
    %396 = vector.extract_strided_slice %9 {offsets = [0, 2], sizes = [1, 1], strides = [1, 1]} : vector<1x128xf32> to vector<1x1xf32>
    %397 = vector.broadcast %396 : vector<1x1xf32> to vector<1x128xf32>
    %398 = arith.subf %395, %397 : vector<1x128xf32>
    %cst_52 = arith.constant 2.000000e+00 : f32
    %399 = vector.broadcast %cst_52 : f32 to vector<1x128xf32>
    %400 = arith.cmpf oeq, %2, %399 : vector<1x128xf32>
    %401 = arith.extui %400 : vector<1x128xi1> to vector<1x128xi32>
    %402 = arith.sitofp %401 : vector<1x128xi32> to vector<1x128xf32>
    %403 = arith.mulf %402, %398 : vector<1x128xf32>
    %404 = arith.addf %368, %403 : vector<1x128xf32>
    %405 = tpu.iota {dimensions = array<i32: 0>} : vector<8x128xi32>
    %cst_53 = arith.constant 0.000000e+00 : f32
    %406 = vector.broadcast %cst_53 : f32 to vector<8x128xf32>
    %c0_i32 = arith.constant 0 : i32
    %407 = vector.broadcast %c0_i32 : i32 to vector<8x128xi32>
    %408 = arith.cmpi eq, %405, %407 : vector<8x128xi32>
    %409 = vector.shape_cast %286 : vector<1x128xf32> to vector<1x128xf32>
    %410 = vector.broadcast %409 : vector<1x128xf32> to vector<8x128xf32>
    %411 = arith.select %408, %410, %406 : vector<8x128xi1>, vector<8x128xf32>
    %c1_i32 = arith.constant 1 : i32
    %412 = vector.broadcast %c1_i32 : i32 to vector<8x128xi32>
    %413 = arith.cmpi eq, %405, %412 : vector<8x128xi32>
    %414 = vector.shape_cast %294 : vector<1x128xf32> to vector<1x128xf32>
    %415 = vector.broadcast %414 : vector<1x128xf32> to vector<8x128xf32>
    %416 = arith.select %413, %415, %411 : vector<8x128xi1>, vector<8x128xf32>
    %c2_i32 = arith.constant 2 : i32
    %417 = vector.broadcast %c2_i32 : i32 to vector<8x128xi32>
    %418 = arith.cmpi eq, %405, %417 : vector<8x128xi32>
    %419 = vector.shape_cast %404 : vector<1x128xf32> to vector<1x128xf32>
    %420 = vector.broadcast %419 : vector<1x128xf32> to vector<8x128xf32>
    %421 = arith.select %418, %420, %416 : vector<8x128xi1>, vector<8x128xf32>
    %c3_i32 = arith.constant 3 : i32
    %422 = vector.broadcast %c3_i32 : i32 to vector<8x128xi32>
    %423 = arith.cmpi eq, %405, %422 : vector<8x128xi32>
    %cst_54 = arith.constant 0.000000e+00 : f32
    %424 = vector.broadcast %cst_54 : f32 to vector<1x128xf32>
    %425 = arith.subf %424, %295 : vector<1x128xf32>
    %426 = vector.shape_cast %425 : vector<1x128xf32> to vector<1x128xf32>
    %427 = vector.broadcast %426 : vector<1x128xf32> to vector<8x128xf32>
    %428 = arith.select %423, %427, %421 : vector<8x128xi1>, vector<8x128xf32>
    %c0_55 = arith.constant 0 : index
    %c0_56 = arith.constant 0 : index
    %429 = vector.load %arg3[%c0_55, %c0_56] : memref<8x128xf32, #tpu.memory_space<vmem>>, vector<8x128xf32>
    tpu.vector_store %arg3[%c0_55, %c0_56], %428 {strides = array<i32>} : memref<8x128xf32, #tpu.memory_space<vmem>>, vector<8x128xf32>,
    return
  }
  func.func @transform_0(%arg0: i32) -> (i32, i32) {
    %c0_i32 = arith.constant 0 : i32
    %c0_i32_0 = arith.constant 0 : i32
    return %c0_i32, %arg0 : i32, i32
  }
  func.func @transform_1(%arg0: i32) -> (i32, i32) {
    %c0_i32 = arith.constant 0 : i32
    %c0_i32_0 = arith.constant 0 : i32
    %c0_i32_1 = arith.constant 0 : i32
    return %c0_i32, %c0_i32_0 : i32, i32
  }
  func.func @transform_2(%arg0: i32) -> (i32, i32) {
    %c0_i32 = arith.constant 0 : i32
    %c0_i32_0 = arith.constant 0 : i32
    return %c0_i32, %arg0 : i32, i32
  }
}

</mosaic_0001>

<bundles_post_ra>
// kernel: tpu_custom_call.1
= control target key start
LH: loop header
LB: loop body
LE: loop exit
PB: predicated region body
PF: predicated region fallthrough
CT: control target
= control target key end

     0   :  { %7 = vsyncpa [#allocation3], 0  ;;  %s2272_s0 = inlined_call_operand.hbm [shape: f32[8,256], index: 0, kind: input, shape index: {}]   ;;  %s2273_s1 = inlined_call_operand.hbm [shape: f32[128,128], index: 1, kind: input, shape index: {}]   ;;  %s2274_s2 = inlined_call_operand.hbm [shape: f32[8,256], index: 2, kind: output, shape index: {}]  }
   0x1   :  { %9 = vsyncpa [#allocation3 + $0x1], 0 }
   0x2   :  { %10 = vsyncpa [#allocation6], 0 }
   0x3   :  { %11 = vsyncpa [#allocation4], 0 }
   0x4   :  { %13 = vsyncpa [#allocation4 + $0x1], 0  ;;  %s1616_s9 = smov 0   ;;  %s1618_s10 = smov 0  }
   0x5   :  { %s1620_s11 = smov 0   ;;  %s1622_s12 = smov 0  }
   0x6 LB: > { %s108_s15 = sshll.u32 %s2273_s1, 4  ;;  %s1640_s16 = sadd.s32 4294967295, %s1587_s12   ;;  %s1587_s12 = sphi %s1622_s12, %s2309_s12   ;;  %s1583_s11 = sphi %s1620_s11, %s2308_s11   ;;  %s1579_s10 = sphi %s1618_s10, %s2307_s10   ;;  %s1575_s9 = sphi %s1616_s9, %s2306_s9   ;;  %s109_s15 = int_to_ptr.hbm [resolvable:$true] %s108_s15 }
   0x7   : > { %p1267_p0 = scmp.ge.s32.totalorder %s1587_s12, 1  ;;  %p40_p1 = scmp.eq.s32.totalorder %s1640_s16, 0 }
   0x8   : > { %p97_p2 = scmp.lt.s32.totalorder %s1587_s12, 3  ;;  %s1589_s18 = smov [#allocation5]  }
   0x9   : > { %s110_s19 = sshll.u32 %s1589_s18, 4  ;;  %s1590_s20 = smov 128   ;;  %s111_s19 = int_to_ptr.vmem [resolvable:$true] %s110_s19 }
   0xa   : > { %p1645_p3 = pnand %p1267_p0, %p97_p2  ;;  %s1591_s21 = smov 8  }
   0xb   : > { %s1266_s22 = sadd.s32 4294967294, %s1587_s12   ;;  %s1656_s23 = sadd.s32 1, %s1587_s12  }
   0xc   : > { %p1291_p4 = pneg %p1645_p3  ;;  %s26_s24 = sadd.s32 1, %s1583_s11 }
   0xd   : > { %s23_s25 = ssub.s32 %s1587_s12, %s1656_s23  ;;  %p33_p7 = scmp.ne.s32.totalorder %s1583_s11, %s1579_s10 }
   0xe   : > { %p1292_p6 = pnand %p1291_p4, %p40_p1  ;;  %p24_p8 = scmp.eq.s32.totalorder %s23_s25, 0 }
   0xf   : > { %p34_p9 = scmp.eq.s32.totalorder %s1587_s12, 0  ;;  %p39_p10 = scmp.ne.s32.totalorder %s1579_s10, %s1575_s9 }
  0x10   : > { %1294 = dma.hbm_to_vmem [thread:$0]  (!%p1292_p6), %s109_s15, 2048, %s111_s19, [#allocation6], %s1590_s20, %s1590_s20, %s1591_s21  }
  0x11   : > { %p84_p11 = scmp.eq.s32.totalorder %s1640_s16, 1  ;;  %p1672_p12 = por %p40_p1, %p39_p10 }
  0x12   : > { %s1668_s26 = scalar_select %p24_p8, %s1583_s11, %s26_s24  }
  0x13   : > { %p1676_p13 = por %p84_p11, %p33_p7  ;;  %p90_p0 = scmp.eq.s32.totalorder %s1266_s22, 1 }
  0x14   : > { %p35_p2 = por %p34_p9, %p33_p7  ;;  %s124_s29 = sand.u32 1, %s1583_s11  }
  0x15   : > { %p1681_p4 = por %p90_p0, %p39_p10  ;;  %p1304_p6 = scmp.lt.s32.totalorder %s1587_s12, 2 }
  0x16   : > { %s1270_s3 = sshll.u32 %s124_s29, 3  ;;  %s1271_s4 = sshll.u32 %s1587_s12, 3 }
  0x17   : > { %s132_s7 = scalar_lea.hbm %s2272_s0, %s1271_s4  ;;  %s128_s13 = scalar_lea.vmem [#allocation2], %s1270_s3 }
  0x18   : > { %s134_s8 = sshll.u32 %s132_s7, 4  ;;  %s136_s14 = sshll.u32 %s128_s13, 4  ;;  %s135_s8 = int_to_ptr.hbm [resolvable:$true] %s134_s8  ;;  %s137_s14 = int_to_ptr.vmem [resolvable:$true] %s136_s14 }
  0x19   : > { %p1690_p8 = pnand %p1304_p6, %p35_p2  ;;  %s125_s18 = scalar_lea.sflag [#allocation3], %s124_s29 }
  0x1a   : > { %s1487_s19 = sshra.s32 %s135_s8, 4  ;;  %s1494_s24 = scalar_lea.hbm %s2272_s0, 16  ;;  %s1488_s19 = int_to_ptr.hbm [resolvable:$true] %s1487_s19 }
  0x1b   : > { %s1489_s20 = scalar_lea.hbm %s1488_s19, 8  ;;  %p1491_p9 = pneg %p1690_p8 }
  0x1c   : > { %p1490_p7 = scmp.ne.s32.totalorder %s1488_s19, %s1489_s20  ;;  %p1495_p0 = scmp.lt.s32.totalorder %s1488_s19, %s2272_s0 }
  0x1d   : > { %p1496_p2 = scmp.lt.s32.totalorder %s1494_s24, %s1489_s20 }
  0x1e   : > { %p1492_p10 = pnand %p1491_p9, %p1490_p7 }
  0x1f   : > { %p1497_p6 = por %p1496_p2, %p1495_p0 }
  0x20   : > { %p1493_p11 = pneg %p1492_p10 }
  0x22   : > { %p1498_p5 = pnand %p1497_p6, %p1493_p11 }
  0x24   : > { %1501 = shalt.err (!%p1498_p5)
}
  0x25   : > { %1298 = dma.hbm_to_vmem [thread:$0]  (!%p1690_p8), %s135_s8, 128, %s137_s14, %s125_s18  }
  0x26   : > { %145 = sbr.rel (%p1645_p3) target bundleno = 554 (0x22a), region = 28 }
  0x2b   : > { %s1707_s29 = sand.u32 1, %s1579_s10  }
  0x2c   : > { %s1273_s4 = sshll.u32 %s1707_s29, 3  ;;  %s148_s5 = scalar_lea.sflag [#allocation3], %s1707_s29 }
  0x2d   : > { %s1713_s6 = scalar_lea.vmem [#allocation2], %s1273_s4 }
  0x2e   : > { %1562 = dma.done.wait (%p1672_p12), %s148_s5, 128  }
  0x2f   : > { %1564 = vsyncadd (%p1672_p12), %s148_s5, 4294967168 }
  0x30   : > { %1566 = dma.done.wait (%p40_p1), [#allocation6], 2048  }
  0x31   : > { %1568 = vsyncadd (%p40_p1), [#allocation6], 4294965248  ;;  %v2275_v0 = vmov 1   ;;  %v2278_v1 = vmov 0   ;;  %v1726_v2 = vld [vmem:[#allocation5 + $0x28] sm:$0xff]  ;;  %v183_v3 = vld [vmem:[#allocation5 + $0x10] sm:$0xff] }
  0x32   : > { %1354 = vset.pattern.permute.xlu0 %v2275_v0  ;;  %1352 = vset.pattern.permute.xlu2 %v2278_v1  ;;  %v182_v4 = vld [vmem:[#allocation5 + $0x8] sm:$0xff]  ;;  %v1729_v5 = vld [vmem:[#allocation5 + $0x20] sm:$0xff]  ;;  %v184_v6 = vld [vmem:[#allocation5 + $0x18] sm:$0xff]  ;;  %v2276_v15 = vmov 2   ;;  %v1595_v16 = vmov 3   ;;  %v1596_v17 = vmov 4  }
  0x33   : > { %1351 = vset.pattern.permute.xlu1 %v2278_v1  ;;  %229 = vperm.xlu2 %1352, %v1726_v2   ;;  %v181_v7 = vld [vmem:[#allocation5] sm:$0xff]  ;;  %v1733_v8 = vld [vmem:[#allocation5 + $0x30] sm:$0xff]  ;;  %v1738_v9 = vld [vmem:[#allocation5 + $0x38] sm:$0xff]  ;;  %v1597_v18 = vmov 6   ;;  %v1598_v20 = vmov 7   ;;  %v1599_v26 = vmov 5  }
  0x34   : > { %209 = vperm.xlu1 %1351, %v183_v3   ;;  %251 = vperm.xlu0 %1354, %v182_v4   ;;  %v191_v10 = vld [vmem:[#allocation5 + $0x50] sm:$0xff]  ;;  %v1742_v11 = vld [vmem:[#allocation5 + $0x40] sm:$0xff]  ;;  %v1744_v12 = vld [vmem:[#allocation5 + $0x48] sm:$0xff]  ;;  %s1280_s17 = sshll.u32 %s1640_s16, 3  ;;  %s177_s16 = scalar_lea.vmem [#allocation7], %s1273_s4 }
  0x35   : > { %v1749_v13 = vld [vmem:[#allocation5 + $0x58] sm:$0xff]  ;;  %v193_v14 = vld [vmem:[#allocation5 + $0x60] sm:$0x1]  ;;  %s1181_s8 = scalar_lea.hbm %s2274_s2, %s1280_s17  ;;  %s1183_s13 = sshll.u32 %s177_s16, 4  ;;  %s1184_s13 = int_to_ptr.vmem [resolvable:$true] %s1183_s13 }
  0x36   : > { %v1392_v32 = vld [vmem:[%s1713_s6] ss:$0 sm:$0xff]  ;;  %v1391_v36 = vld [vmem:[%s1713_s6 + $0x1] ss:$0 sm:$0xff]  ;;  %s1185_s14 = sshll.u32 %s1181_s8, 4  ;;  %s1171_s15 = scalar_lea.sflag [#allocation4], %s1707_s29  ;;  %s1186_s14 = int_to_ptr.hbm [resolvable:$true] %s1185_s14 }
  0x37   : > { %s1531_s18 = sshra.s32 %s1186_s14, 4  ;;  %s1537_s22 = scalar_lea.hbm %s2274_s2, 16  ;;  %s1532_s18 = int_to_ptr.hbm [resolvable:$true] %s1531_s18 }
  0x38   : > { %s1533_s19 = scalar_lea.hbm %s1532_s18, 8  ;;  %p1538_p12 = scmp.lt.s32.totalorder %s1532_s18, %s2274_s2 }
  0x39   : > { %p1534_p1 = scmp.ne.s32.totalorder %s1532_s18, %s1533_s19  ;;  %p1539_p8 = scmp.lt.s32.totalorder %s1537_s22, %s1533_s19 }
  0x3b   : > { %1353 = vset.pattern.permute.xlu2 %v2275_v0  ;;  %p1535_p3 = pnand %p1534_p1, %p1676_p13  ;;  %p1540_p7 = por %p1539_p8, %p1538_p12 }
  0x3c   : > { %224 = vperm.xlu1 %1351, %v1729_v5   ;;  %259 = vperm.xlu0 %1354, %v184_v6  }
  0x3d   : > { %247 = vperm.xlu2 %1353, %v181_v7   ;;  %p1536_p5 = pneg %p1535_p3 }
  0x3f   : > { %p1541_p9 = pnand %p1540_p7, %p1536_p5 }
  0x44   : > { %214 = vperm.xlu1 %1351, %v184_v6   ;;  %1357 = vset.pattern.permute.xlu0 %v2278_v1 }
  0x45   : > { %1355 = vset.pattern.permute.xlu2 %v2278_v1  ;;  %199 = vperm.xlu0 %1357, %v181_v7  }
  0x46   : > { %234 = vperm.xlu2 %1355, %v1733_v8  }
  0x4c   : > { %1356 = vset.pattern.permute.xlu1 %v2275_v0 }
  0x4d   : > { %255 = vperm.xlu1 %1356, %v183_v3   ;;  %204 = vperm.xlu0 %1357, %v182_v4  }
  0x4e   : > { %239 = vperm.xlu2 %1355, %v1738_v9  }
  0x55   : > { %1358 = vset.pattern.permute.xlu1 %v2278_v1  ;;  %325 = vperm.xlu0 %1357, %v191_v10  }
  0x56   : > { %317 = vperm.xlu1 %1358, %v1742_v11   ;;  %321 = vperm.xlu2 %1355, %v1744_v12  }
  0x5d   : > { %1362 = vset.pattern.permute.xlu0 %v2275_v0 }
  0x5e   : > { %1359 = vset.pattern.permute.xlu1 %v2275_v0  ;;  %365 = vperm.xlu0 %1362, %v1749_v13  }
  0x5f   : > { %1360 = vset.pattern.permute.xlu2 %v2275_v0  ;;  %353 = vperm.xlu1 %1359, %v1742_v11  }
  0x60   : > { %357 = vperm.xlu2 %1360, %v1744_v12  }
  0x66   : > { %402 = vperm.xlu0 %1362, %v1733_v8  }
  0x67   : > { %1361 = vset.pattern.permute.xlu1 %v2278_v1 }
  0x68   : > { %361 = vperm.xlu2 %1360, %v191_v10   ;;  %329 = vperm.xlu1 %1361, %v1749_v13  }
  0x6e   : > { %1365 = vset.pattern.permute.xlu0 %v2276_v15 }
  0x6f   : > { %488 = vperm.xlu0 %1365, %v1726_v2  }
  0x70   : > { %383 = vperm.xlu2 %1360, %v193_v14   ;;  %348 = vperm.xlu1 %1361, %v193_v14  }
  0x77   : > { %1369 = vset.pattern.permute.xlu0 %v1595_v16 }
  0x78   : > { %398 = vperm.xlu2 %1360, %v1726_v2   ;;  %1363 = vset.pattern.permute.xlu1 %v2275_v0 }
  0x79   : > { %582 = vperm.xlu0 %1369, %v1733_v8   ;;  %394 = vperm.xlu1 %1363, %v1729_v5  }
  0x80   : > { %1364 = vset.pattern.permute.xlu2 %v2276_v15 }
  0x81   : > { %1372 = vset.pattern.permute.xlu0 %v1596_v17  ;;  %484 = vperm.xlu2 %1364, %v1729_v5  }
  0x82   : > { %406 = vperm.xlu1 %1363, %v1738_v9   ;;  %676 = vperm.xlu0 %1372, %v1738_v9  }
  0x89   : > { %496 = vperm.xlu2 %1364, %v1738_v9  }
  0x8a   : > { %1366 = vset.pattern.permute.xlu1 %v2276_v15  ;;  %1375 = vset.pattern.permute.xlu0 %v1597_v18 }
  0x8b   : > { %492 = vperm.xlu1 %1366, %v1733_v8   ;;  %844 = vperm.xlu0 %1375, %v1729_v5  }
  0x8d   : > { %v230_v19 = vpop.permute.xlu2 %229 }
  0x91   : > { %1368 = vset.pattern.permute.xlu2 %v1595_v16 }
  0x92   : > { %578 = vperm.xlu2 %1368, %v1726_v2  }
  0x93   : > { %1367 = vset.pattern.permute.xlu1 %v1595_v16  ;;  %1379 = vset.pattern.permute.xlu0 %v1598_v20 }
  0x94   : > { %574 = vperm.xlu1 %1367, %v1729_v5   ;;  %938 = vperm.xlu0 %1379, %v1726_v2  }
  0x97   : > { %v1778_v21 = vpop.permute.xlu2 %247 }
  0x98   : > { %v263_v45 = vmul.f32 %v1391_v36, %v1778_v21 }
  0x9a   : > { %1370 = vset.pattern.permute.xlu2 %v1596_v17 }
  0x9b   : > { %664 = vperm.xlu2 %1370, %v1729_v5  }
  0x9c   : > { %586 = vperm.xlu1 %1367, %v1738_v9   ;;  %1383 = vset.pattern.permute.xlu0 %v2276_v15 }
  0x9d   : > { %295 = vperm.xlu0 %1383, %v191_v10  }
  0xa0   : > { %v235_v22 = vpop.permute.xlu2 %234 }
  0xa3   : > { %672 = vperm.xlu2 %1370, %v1733_v8  }
  0xa4   : > { %1371 = vset.pattern.permute.xlu1 %v1596_v17 }
  0xa5   : > { %668 = vperm.xlu1 %1371, %v1726_v2   ;;  %1386 = vset.pattern.permute.xlu0 %v2275_v0 }
  0xa6   : > { %v1786_v23 = vpop.permute.xlu1 %209  ;;  %v1788_v24 = vpop.permute.xlu0 %251 }
  0xa7   : > { %v220_v39 = vmul.f32 %v1392_v32, %v1786_v23  ;;  %v264_v42 = vmul.f32 %v1391_v36, %v1788_v24 }
  0xa8   : > { %v240_v25 = vpop.permute.xlu2 %239 }
  0xa9   : > { %v244_v46 = vadd.f32 %v235_v22, %v220_v39 }
  0xab   : > { %1374 = vset.pattern.permute.xlu2 %v1599_v26 }
  0xac   : > { %758 = vperm.xlu2 %1374, %v1726_v2  }
  0xad   : > { %1373 = vset.pattern.permute.xlu1 %v1599_v26 }
  0xae   : > { %754 = vperm.xlu1 %1373, %v1729_v5   ;;  %v225_v27 = vpop.permute.xlu1 %224  ;;  %v1792_v28 = vpop.permute.xlu0 %259 }
  0xaf   : > { %v266_v53 = vmul.f32 %v1391_v36, %v1792_v28 }
  0xb0   : > { %v1794_v29 = vpop.permute.xlu2 %321 }
  0xb4   : > { %766 = vperm.xlu2 %1374, %v1738_v9  }
  0xb6   : > { %762 = vperm.xlu1 %1373, %v1733_v8   ;;  %v1798_v30 = vpop.permute.xlu1 %214 }
  0xb7   : > { %v1800_v31 = vpop.permute.xlu0 %199  ;;  %v221_v43 = vmul.f32 %v1392_v32, %v1798_v30 }
  0xb8   : > { %v218_v34 = vmul.f32 %v1392_v32, %v1800_v31 }
  0xb9   : > { %v245_v49 = vadd.f32 %v240_v25, %v221_v43 }
  0xba   : > { %v1804_v33 = vpop.permute.xlu2 %357  ;;  %v242_v40 = vadd.f32 %v225_v27, %v218_v34 }
  0xbb   : > { %v270_v55 = vadd.f32 %v266_v53, %v245_v49 }
  0xbc   : > { %1377 = vset.pattern.permute.xlu2 %v1597_v18  ;;  %v267_v48 = vadd.f32 %v263_v45, %v242_v40 }
  0xbd   : > { %852 = vperm.xlu2 %1377, %v1733_v8  }
  0xbe   : > { %1376 = vset.pattern.permute.xlu1 %v1597_v18 }
  0xbf   : > { %848 = vperm.xlu1 %1376, %v1726_v2   ;;  %v1808_v35 = vpop.permute.xlu1 %255  ;;  %v1811_v37 = vpop.permute.xlu0 %204 }
  0xc0   : > { %v219_v38 = vmul.f32 %v1392_v32, %v1811_v37  ;;  %v265_v44 = vmul.f32 %v1391_v36, %v1808_v35  ;;  %v179_v36 = vld [vmem:[%s1713_s6 + $0x1] sm:$0x1] }
  0xc2   : > { %v243_v41 = vadd.f32 %v230_v19, %v219_v38  ;;  %v269_v50 = vadd.f32 %v265_v44, %v244_v46  ;;  %v1822_v51 = vpop.permute.xlu2 %361  ;;  %v178_v44 = vld [vmem:[%s1713_s6] sm:$0x1] }
  0xc4   : > { %v268_v47 = vadd.f32 %v264_v42, %v243_v41 }
  0xc5   : > { %1378 = vset.pattern.permute.xlu2 %v1598_v20 }
  0xc6   : > { %934 = vperm.xlu2 %1378, %v1729_v5   ;;  %1393 = vtanh.f32 %v268_v47 }
  0xc7   : > { %856 = vperm.xlu1 %1376, %v1738_v9   ;;  %v1827_v54 = vpop.permute.xlu0 %325  ;;  %1395 = vtanh.f32 %v267_v48 }
  0xc8   : > { %v1824_v52 = vpop.permute.xlu1 %317  ;;  %1397 = vtanh.f32 %v269_v50 }
  0xc9   : > { %1399 = vtanh.f32 %v270_v55 }
  0xca   : > { %v1838_v59 = vpop.permute.xlu2 %383 }
  0xcc   : > { %v1831_v56 = vpop.eup %1393 }
  0xcd   : > { %v1834_v57 = vpop.eup %1395  ;;  %v369_v62 = vmul.f32 %v1831_v56, %v1804_v33  ;;  %v333_v63 = vmul.f32 %v1831_v56, %v1794_v29 }
  0xce   : > { %946 = vperm.xlu2 %1378, %v1738_v9   ;;  %v1836_v58 = vpop.eup %1397  ;;  %v332_v6 = vmul.f32 %v1834_v57, %v1824_v52 }
  0xcf   : > { %1380 = vset.pattern.permute.xlu1 %v1598_v20  ;;  %v370_v3 = vmul.f32 %v1836_v58, %v1822_v51  ;;  %v1852_v5 = vpop.eup %1399  ;;  %v334_v14 = vmul.f32 %v1836_v58, %v1827_v54 }
  0xd0   : > { %942 = vperm.xlu1 %1380, %v1733_v8   ;;  %v1848_v2 = vpop.permute.xlu0 %365  ;;  %v336_v9 = vadd.f32 %v333_v63, %v332_v6 }
  0xd1   : > { %v1840_v60 = vpop.permute.xlu1 %353  ;;  %v371_v7 = vmul.f32 %v1852_v5, %v1848_v2 }
  0xd2   : > { %v368_v61 = vmul.f32 %v1834_v57, %v1840_v60  ;;  %v399_v18 = vpop.permute.xlu2 %398  ;;  %v337_v20 = vadd.f32 %v336_v9, %v334_v14 }
  0xd4   : > { %v372_v4 = vadd.f32 %v369_v62, %v368_v61 }
  0xd6   : > { %1382 = vset.pattern.permute.xlu2 %v2276_v15  ;;  %v373_v8 = vadd.f32 %v372_v4, %v370_v3 }
  0xd7   : > { %290 = vperm.xlu2 %1382, %v1744_v12  }
  0xd8   : > { %1381 = vset.pattern.permute.xlu1 %v2276_v15  ;;  %v374_v10 = vadd.f32 %v373_v8, %v371_v7  ;;  %v403_v3 = vpop.permute.xlu0 %402 }
  0xd9   : > { %285 = vperm.xlu1 %1381, %v1742_v11  }
  0xda   : > { %v375_v16 = vrot.slane %v374_v10, 4  ;;  %v1864_v17 = vpop.permute.xlu1 %329 }
  0xdb   : > { %v335_v19 = vmul.f32 %v1852_v5, %v1864_v17  ;;  %v1873_v39 = vpop.permute.xlu2 %484 }
  0xdc   : > { %v376_v22 = vadd.f32 %v375_v16, %v374_v10 }
  0xdd   : > { %v338_v12 = vadd.f32 %v337_v20, %v335_v19 }
  0xde   : > { %v377_v25 = vrot.slane %v376_v22, 2 }
  0xdf   : > { %1384 = vset.pattern.permute.xlu2 %v2278_v1  ;;  %v339_v26 = vrot.slane %v338_v12, 4 }
  0xe0   : > { %v378_v11 = vadd.f32 %v377_v25, %v376_v22 }
  0xe1   : > { %300 = vperm.xlu1 %1381, %v1749_v13   ;;  %v340_v27 = vadd.f32 %v339_v26, %v338_v12 }
  0xe2   : > { %v379_v32 = vrot.slane %v378_v11, 1  ;;  %v1870_v34 = vpop.permute.xlu1 %348 }
  0xe3   : > { %v341_v38 = vrot.slane %v340_v27, 2  ;;  %v1881_v49 = vpop.permute.xlu2 %496 }
  0xe4   : > { %v380_v40 = vadd.f32 %v379_v32, %v378_v11 }
  0xe5   : > { %v342_v41 = vadd.f32 %v341_v38, %v340_v27 }
  0xe6   : > { %v381_v42 = vadd.f32 %v380_v40, %v179_v36 }
  0xe7   : > { %v343_v43 = vrot.slane %v342_v41, 1 }
  0xe8   : > { %v1878_v46 = vadd.f32 %v1838_v59, %v381_v42 }
  0xe9   : > { %1385 = vset.pattern.permute.xlu1 %v2275_v0  ;;  %v344_v45 = vadd.f32 %v343_v43, %v342_v41 }
  0xea   : > { %v413_v50 = vperm.slane %v1878_v46, 0 }
  0xeb   : > { %v345_v13 = vadd.f32 %v344_v45, %v178_v44  ;;  %v395_v47 = vpop.permute.xlu1 %394 }
  0xec   : > { %v415_v4 = vmul.f32 %v413_v50, %v1788_v24  ;;  %v416_v6 = vmul.f32 %v413_v50, %v1808_v35  ;;  %v414_v10 = vmul.f32 %v413_v50, %v1778_v21  ;;  %v417_v12 = vmul.f32 %v413_v50, %v1792_v28  ;;  %v1892_v25 = vpop.permute.xlu2 %578 }
  0xed   : > { %v351_v48 = vadd.f32 %v1870_v34, %v345_v13 }
  0xef   : > { %v388_v53 = vperm.slane %v351_v48, 0 }
  0xf1   : > { %v390_v55 = vmul.f32 %v388_v53, %v1811_v37  ;;  %v391_v61 = vmul.f32 %v388_v53, %v1786_v23  ;;  %v389_v62 = vmul.f32 %v388_v53, %v1800_v31  ;;  %v392_v63 = vmul.f32 %v388_v53, %v1798_v30 }
  0xf3   : > { %v410_v7 = vadd.f32 %v399_v18, %v390_v55  ;;  %v411_v8 = vadd.f32 %v403_v3, %v391_v61  ;;  %v409_v9 = vadd.f32 %v395_v47, %v389_v62 }
  0xf4   : > { %v407_v14 = vpop.permute.xlu1 %406 }
  0xf5   : > { %v412_v16 = vadd.f32 %v407_v14, %v392_v63  ;;  %v419_v19 = vadd.f32 %v415_v4, %v410_v7  ;;  %v420_v20 = vadd.f32 %v416_v6, %v411_v8  ;;  %v418_v22 = vadd.f32 %v414_v10, %v409_v9  ;;  %v1910_v43 = vpop.permute.xlu2 %664 }
  0xf7   : > { %1401 = vtanh.f32 %v419_v19  ;;  %v421_v26 = vadd.f32 %v417_v12, %v412_v16 }
  0xf8   : > { %1403 = vtanh.f32 %v420_v20 }
  0xf9   : > { %1405 = vtanh.f32 %v418_v22 }
  0xfa   : > { %1407 = vtanh.f32 %v421_v26 }
  0xfd   : > { %v1894_v11 = vpop.eup %1401  ;;  %v493_v18 = vpop.permute.xlu1 %492 }
  0xfe   : > { %v1896_v27 = vpop.eup %1403  ;;  %v448_v32 = vmul.f32 %v1894_v11, %v1794_v29  ;;  %v463_v36 = vmul.f32 %v1894_v11, %v1804_v33  ;;  %v1922_v9 = vpop.permute.xlu2 %672 }
  0xff   : > { %v1902_v38 = vpop.eup %1405  ;;  %v449_v13 = vmul.f32 %v1896_v27, %v1827_v54  ;;  %v464_v47 = vmul.f32 %v1896_v27, %v1822_v51 }
 0x100   : > { %v447_v40 = vmul.f32 %v1902_v38, %v1824_v52  ;;  %v462_v41 = vmul.f32 %v1902_v38, %v1840_v60  ;;  %v1908_v42 = vpop.eup %1407 }
 0x101   : > { %v450_v50 = vmul.f32 %v1908_v42, %v1864_v17  ;;  %v465_v55 = vmul.f32 %v1908_v42, %v1848_v2 }
 0x102   : > { %v451_v44 = vadd.f32 %v448_v32, %v447_v40  ;;  %v466_v45 = vadd.f32 %v463_v36, %v462_v41 }
 0x104   : > { %v452_v53 = vadd.f32 %v451_v44, %v449_v13  ;;  %v467_v61 = vadd.f32 %v466_v45, %v464_v47  ;;  %v489_v47 = vpop.permute.xlu0 %488 }
 0x106   : > { %v453_v62 = vadd.f32 %v452_v53, %v450_v50  ;;  %v468_v63 = vadd.f32 %v467_v61, %v465_v55  ;;  %v1920_v3 = vpop.permute.xlu1 %574  ;;  %v1927_v41 = vpop.permute.xlu2 %758 }
 0x108   : > { %v454_v4 = vrot.slane %v453_v62, 4  ;;  %v469_v6 = vrot.slane %v468_v63, 4 }
 0x10a   : > { %v455_v7 = vadd.f32 %v454_v4, %v453_v62  ;;  %v470_v8 = vadd.f32 %v469_v6, %v468_v63 }
 0x10c   : > { %v456_v10 = vrot.slane %v455_v7, 2  ;;  %v471_v14 = vrot.slane %v470_v8, 2 }
 0x10e   : > { %v457_v16 = vadd.f32 %v456_v10, %v455_v7  ;;  %v472_v19 = vadd.f32 %v471_v14, %v470_v8  ;;  %v1924_v20 = vpop.permute.xlu1 %586 }
 0x110   : > { %v458_v22 = vrot.slane %v457_v16, 1  ;;  %v473_v12 = vrot.slane %v472_v19, 1 }
 0x112   : > { %v459_v26 = vadd.f32 %v458_v22, %v457_v16  ;;  %v474_v32 = vadd.f32 %v473_v12, %v472_v19 }
 0x114   : > { %v460_v36 = vadd.f32 %v459_v26, %v351_v48  ;;  %v475_v40 = vadd.f32 %v474_v32, %v1878_v46  ;;  %v1949_v26 = vpop.permute.xlu2 %766 }
 0x115   : > { %2284 = vst [vmem:[#allocation11_spill] sm:$0xff] %v1949_v26 }
 0x116   : > { %v1930_v44 = vadd.f32 %v460_v36, %v1870_v34  ;;  %v1933_v45 = vadd.f32 %v475_v40, %v1838_v59 }
 0x117   : > { %v1935_v13 = vpop.permute.xlu1 %668 }
 0x118   : > { %v478_v50 = vperm.slane %v1930_v44, 0  ;;  %v503_v53 = vperm.slane %v1933_v45, 0 }
 0x11a   : > { %v479_v55 = vmul.f32 %v478_v50, %v1800_v31  ;;  %v480_v48 = vmul.f32 %v478_v50, %v1811_v37  ;;  %v482_v46 = vmul.f32 %v478_v50, %v1798_v30  ;;  %v504_v61 = vmul.f32 %v503_v53, %v1778_v21 }
 0x11b   : > { %v481_v62 = vmul.f32 %v478_v50, %v1786_v23  ;;  %v505_v7 = vmul.f32 %v503_v53, %v1788_v24  ;;  %v507_v8 = vmul.f32 %v503_v53, %v1792_v28  ;;  %v506_v14 = vmul.f32 %v503_v53, %v1808_v35 }
 0x11c   : > { %v499_v63 = vadd.f32 %v1873_v39, %v479_v55  ;;  %v500_v4 = vadd.f32 %v489_v47, %v480_v48  ;;  %v502_v6 = vadd.f32 %v1881_v49, %v482_v46  ;;  %v1953_v39 = vpop.permute.xlu0 %582  ;;  %v1963_v46 = vpop.permute.xlu2 %852 }
 0x11d   : > { %v501_v10 = vadd.f32 %v493_v18, %v481_v62  ;;  %2286 = vst [vmem:[#allocation13_spill] sm:$0xff] %v1963_v46 }
 0x11e   : > { %v508_v16 = vadd.f32 %v504_v61, %v499_v63  ;;  %v509_v19 = vadd.f32 %v505_v7, %v500_v4  ;;  %v511_v12 = vadd.f32 %v507_v8, %v502_v6 }
 0x11f   : > { %v510_v22 = vadd.f32 %v506_v14, %v501_v10 }
 0x120   : > { %v1951_v32 = vpop.permute.xlu1 %754  ;;  %1409 = vtanh.f32 %v508_v16 }
 0x121   : > { %1411 = vtanh.f32 %v509_v19 }
 0x122   : > { %1413 = vtanh.f32 %v510_v22 }
 0x123   : > { %1415 = vtanh.f32 %v511_v12 }
 0x124   : > { %v1967_v6 = vpop.permute.xlu0 %676  ;;  %v1975_v15 = vpop.permute.xlu2 %934 }
 0x125   : > { %2288 = vst [vmem:[#allocation15_spill] sm:$0xff] %v1975_v15 }
 0x126   : > { %v1410_v49 = vpop.eup %1409 }
 0x127   : > { %v1412_v36 = vpop.eup %1411  ;;  %v537_v18 = vmul.f32 %v1410_v49, %v1824_v52  ;;  %v552_v40 = vmul.f32 %v1410_v49, %v1840_v60 }
 0x128   : > { %v1957_v47 = vpop.permute.xlu1 %762  ;;  %v1414_v50 = vpop.eup %1413  ;;  %v538_v53 = vmul.f32 %v1412_v36, %v1794_v29  ;;  %v553_v55 = vmul.f32 %v1412_v36, %v1804_v33 }
 0x129   : > { %2285 = vst [vmem:[#allocation12_spill] sm:$0xff] %v1957_v47  ;;  %v1961_v48 = vpop.eup %1415  ;;  %v539_v61 = vmul.f32 %v1414_v50, %v1827_v54  ;;  %v554_v63 = vmul.f32 %v1414_v50, %v1822_v51 }
 0x12a   : > { %v541_v62 = vadd.f32 %v538_v53, %v537_v18  ;;  %v556_v4 = vadd.f32 %v553_v55, %v552_v40  ;;  %v540_v7 = vmul.f32 %v1961_v48, %v1864_v17  ;;  %v555_v10 = vmul.f32 %v1961_v48, %v1848_v2 }
 0x12c   : > { %v542_v8 = vadd.f32 %v541_v62, %v539_v61  ;;  %v557_v14 = vadd.f32 %v556_v4, %v554_v63  ;;  %v1977_v1 = vpop.permute.xlu0 %844 }
 0x12e   : > { %v543_v16 = vadd.f32 %v542_v8, %v540_v7  ;;  %v558_v19 = vadd.f32 %v557_v14, %v555_v10  ;;  %v1983_v10 = vpop.permute.xlu2 %946 }
 0x12f   : > { %2290 = vst [vmem:[#allocation17_spill] sm:$0xff] %v1983_v10 }
 0x130   : > { %v544_v22 = vrot.slane %v543_v16, 4  ;;  %v559_v12 = vrot.slane %v558_v19, 4 }
 0x131   : > { %v1973_v0 = vpop.permute.xlu1 %848 }
 0x132   : > { %2287 = vst [vmem:[#allocation14_spill] sm:$0xff] %v1973_v0  ;;  %v545_v18 = vadd.f32 %v544_v22, %v543_v16  ;;  %v560_v53 = vadd.f32 %v559_v12, %v558_v19 }
 0x134   : > { %v546_v40 = vrot.slane %v545_v18, 2  ;;  %v561_v55 = vrot.slane %v560_v53, 2  ;;  %v1991_v19 = vpop.permute.xlu0 %938 }
 0x135   : > { %2291 = vst [vmem:[#allocation18_spill] sm:$0xff] %v1991_v19 }
 0x136   : > { %v547_v46 = vadd.f32 %v546_v40, %v545_v18  ;;  %v562_v61 = vadd.f32 %v561_v55, %v560_v53  ;;  %v275_v53 = vmul.f32 %v1834_v57, %v1834_v57  ;;  %v426_v40 = vmul.f32 %v1902_v38, %v1902_v38 }
 0x138   : > { %v548_v62 = vrot.slane %v547_v46, 1  ;;  %v563_v47 = vrot.slane %v562_v61, 1 }
 0x139   : > { %v1979_v26 = vpop.permute.xlu1 %856 }
 0x13a   : > { %2289 = vst [vmem:[#allocation16_spill] sm:$0xff] %v1979_v26  ;;  %v549_v63 = vadd.f32 %v548_v62, %v547_v46  ;;  %v564_v4 = vadd.f32 %v563_v47, %v562_v61  ;;  %v1997_v47 = vmul.f32 %v1852_v5, %v1852_v5  ;;  %v427_v46 = vmul.f32 %v1894_v11, %v1894_v11 }
 0x13b   : > { %v516_v61 = vmul.f32 %v1410_v49, %v1410_v49 }
 0x13c   : > { %v550_v7 = vadd.f32 %v549_v63, %v1930_v44  ;;  %v565_v8 = vadd.f32 %v564_v4, %v1933_v45  ;;  %v277_v44 = vmul.f32 %v1836_v58, %v1836_v58  ;;  %v276_v45 = vmul.f32 %v1831_v56, %v1831_v56 }
 0x13d   : > { %v518_v58 = vmul.f32 %v1414_v50, %v1414_v50  ;;  %v517_v63 = vmul.f32 %v1412_v36, %v1412_v36  ;;  %v279_v36 = vsub.f32 1.0, %v275_v53 }
 0x13e   : > { %v1986_v14 = vadd.f32 %v550_v7, %v1870_v34  ;;  %v1989_v16 = vadd.f32 %v565_v8, %v1838_v59  ;;  %v280_v19 = vsub.f32 1.0, %v276_v45 }
 0x140   : > { %v568_v22 = vperm.slane %v1986_v14, 0  ;;  %v593_v12 = vperm.slane %v1989_v16, 0 }
 0x142   : > { %v2005_v18 = vpop.permute.xlu1 %942  ;;  %v570_v5 = vmul.f32 %v568_v22, %v1811_v37  ;;  %v569_v55 = vmul.f32 %v568_v22, %v1800_v31  ;;  %v571_v62 = vmul.f32 %v568_v22, %v1786_v23  ;;  %v572_v56 = vmul.f32 %v568_v22, %v1798_v30 }
 0x143   : > { %2292 = vst [vmem:[#allocation19_spill] sm:$0xff] %v2005_v18  ;;  %v594_v57 = vmul.f32 %v593_v12, %v1778_v21  ;;  %v595_v7 = vmul.f32 %v593_v12, %v1788_v24  ;;  %v596_v8 = vmul.f32 %v593_v12, %v1808_v35  ;;  %v597_v50 = vmul.f32 %v593_v12, %v1792_v28 }
 0x144   : > { %v589_v11 = vadd.f32 %v1920_v3, %v569_v55  ;;  %v590_v4 = vadd.f32 %v1892_v25, %v570_v5  ;;  %v591_v38 = vadd.f32 %v1953_v39, %v571_v62  ;;  %v592_v49 = vadd.f32 %v1924_v20, %v572_v56  ;;  %v2025_v55 = vpop.permute.xlu2 %290 }
 0x145   : > { %v281_v22 = vsub.f32 1.0, %v277_v44  ;;  %v428_v3 = vmul.f32 %v1896_v27, %v1896_v27  ;;  %v429_v39 = vmul.f32 %v1908_v42, %v1908_v42  ;;  %v431_v62 = vsub.f32 1.0, %v427_v46 }
 0x146   : > { %v598_v10 = vadd.f32 %v594_v57, %v589_v11  ;;  %v599_v18 = vadd.f32 %v595_v7, %v590_v4  ;;  %v600_v25 = vadd.f32 %v596_v8, %v591_v38  ;;  %v601_v5 = vadd.f32 %v597_v50, %v592_v49  ;;  %v2029_v11 = vpop.permute.xlu0 %295 }
 0x147   : > { %v521_v20 = vsub.f32 1.0, %v517_v63  ;;  %v430_v56 = vsub.f32 1.0, %v426_v40  ;;  %v522_v12 = vsub.f32 1.0, %v518_v58  ;;  %v520_v44 = vsub.f32 1.0, %v516_v61 }
 0x148   : > { %1417 = vtanh.f32 %v598_v10  ;;  %v304_v27 = vmul.f32 %v2025_v55, %v280_v19  ;;  %v435_v53 = vmul.f32 %v431_v62, %v2025_v55  ;;  %v432_v40 = vsub.f32 1.0, %v428_v3 }
 0x149   : > { %1419 = vtanh.f32 %v599_v18  ;;  %v525_v4 = vmul.f32 %v521_v20, %v2025_v55  ;;  %v305_v18 = vmul.f32 %v2029_v11, %v281_v22  ;;  %v519_v19 = vmul.f32 %v1961_v48, %v1961_v48 }
 0x14a   : > { %1421 = vtanh.f32 %v600_v25  ;;  %v433_v7 = vsub.f32 1.0, %v429_v39  ;;  %v436_v38 = vmul.f32 %v432_v40, %v2029_v11  ;;  %v526_v8 = vmul.f32 %v522_v12, %v2029_v11 }
 0x14b   : > { %v2034_v45 = vpop.permute.xlu1 %285  ;;  %1423 = vtanh.f32 %v601_v5  ;;  %v282_v49 = vsub.f32 1.0, %v1997_v47  ;;  %v523_v47 = vsub.f32 1.0, %v519_v19 }
 0x14c   : > { %v303_v42 = vmul.f32 %v2034_v45, %v279_v36  ;;  %v434_v10 = vmul.f32 %v430_v56, %v2034_v45  ;;  %v524_v46 = vmul.f32 %v520_v44, %v2034_v45 }
 0x14e   : > { %v307_v61 = vadd.f32 %v304_v27, %v303_v42  ;;  %v438_v58 = vadd.f32 %v435_v53, %v434_v10  ;;  %v528_v63 = vadd.f32 %v525_v4, %v524_v46  ;;  %v1418_v57 = vpop.eup %1417 }
 0x14f   : > { %v1420_v50 = vpop.eup %1419  ;;  %v606_v36 = vmul.f32 %v1418_v57, %v1418_v57  ;;  %v627_v25 = vmul.f32 %v1418_v57, %v1824_v52  ;;  %v642_v22 = vmul.f32 %v1418_v57, %v1840_v60 }
 0x150   : > { %v308_v3 = vadd.f32 %v307_v61, %v305_v18  ;;  %v1422_v5 = vpop.eup %1421  ;;  %v628_v62 = vmul.f32 %v1420_v50, %v1794_v29  ;;  %v643_v48 = vmul.f32 %v1420_v50, %v1804_v33  ;;  %v607_v20 = vmul.f32 %v1420_v50, %v1420_v50 }
 0x151   : > { %v439_v39 = vadd.f32 %v438_v58, %v436_v38  ;;  %v1424_v56 = vpop.eup %1423  ;;  %v610_v44 = vsub.f32 1.0, %v606_v36  ;;  %v608_v27 = vmul.f32 %v1422_v5, %v1422_v5  ;;  %v629_v12 = vmul.f32 %v1422_v5, %v1827_v54 }
 0x152   : > { %v631_v53 = vadd.f32 %v628_v62, %v627_v25  ;;  %v646_v4 = vadd.f32 %v643_v48, %v642_v22  ;;  %v609_v42 = vmul.f32 %v1424_v56, %v1424_v56  ;;  %v644_v10 = vmul.f32 %v1422_v5, %v1822_v51 }
 0x153   : > { %v2051_v46 = vpop.permute.xlu1 %300  ;;  %v612_v18 = vsub.f32 1.0, %v608_v27  ;;  %v630_v40 = vmul.f32 %v1424_v56, %v1864_v17  ;;  %v611_v61 = vsub.f32 1.0, %v607_v20  ;;  %v614_v57 = vmul.f32 %v610_v44, %v2034_v45 }
 0x154   : > { %v632_v58 = vadd.f32 %v631_v53, %v629_v12  ;;  %v645_v38 = vmul.f32 %v1424_v56, %v1848_v2  ;;  %v647_v50 = vadd.f32 %v646_v4, %v644_v10  ;;  %v306_v36 = vmul.f32 %v2051_v46, %v282_v49 }
 0x155   : > { %v613_v19 = vsub.f32 1.0, %v609_v42  ;;  %v615_v25 = vmul.f32 %v611_v61, %v2025_v55  ;;  %v437_v22 = vmul.f32 %v433_v7, %v2051_v46  ;;  %v527_v5 = vmul.f32 %v523_v47, %v2051_v46 }
 0x156   : > { %v633_v62 = vadd.f32 %v632_v58, %v630_v40  ;;  %v648_v48 = vadd.f32 %v647_v50, %v645_v38  ;;  %v309_v27 = vadd.f32 %v308_v3, %v306_v36  ;;  %v529_v15 = vadd.f32 %v528_v63, %v526_v8 }
 0x157   : > { %v616_v20 = vmul.f32 %v612_v18, %v2029_v11  ;;  %v618_v44 = vadd.f32 %v615_v25, %v614_v57  ;;  %v440_v12 = vadd.f32 %v439_v39, %v437_v22  ;;  %v617_v56 = vmul.f32 %v613_v19, %v2051_v46 }
 0x158   : > { %v634_v53 = vrot.slane %v633_v62, 4  ;;  %v649_v4 = vrot.slane %v648_v48, 4  ;;  %v310_v49 = vrot.slane %v309_v27, 4  ;;  %v530_v42 = vadd.f32 %v529_v15, %v527_v5 }
 0x159   : > { %v441_v10 = vrot.slane %v440_v12, 4  ;;  %v619_v61 = vadd.f32 %v618_v44, %v616_v20 }
 0x15a   : > { %v635_v26 = vadd.f32 %v634_v53, %v633_v62  ;;  %v650_v7 = vadd.f32 %v649_v4, %v648_v48  ;;  %v311_v0 = vadd.f32 %v310_v49, %v309_v27  ;;  %v531_v47 = vrot.slane %v530_v42, 4 }
 0x15b   : > { %v442_v40 = vadd.f32 %v441_v10, %v440_v12  ;;  %v620_v58 = vadd.f32 %v619_v61, %v617_v56 }
 0x15c   : > { %v636_v3 = vrot.slane %v635_v26, 2  ;;  %v651_v63 = vrot.slane %v650_v7, 2  ;;  %v312_v8 = vrot.slane %v311_v0, 2  ;;  %v532_v18 = vadd.f32 %v531_v47, %v530_v42 }
 0x15d   : > { %v443_v57 = vrot.slane %v442_v40, 2  ;;  %v621_v39 = vrot.slane %v620_v58, 4 }
 0x15e   : > { %v637_v38 = vadd.f32 %v636_v3, %v635_v26  ;;  %v652_v50 = vadd.f32 %v651_v63, %v650_v7  ;;  %v313_v36 = vadd.f32 %v312_v8, %v311_v0  ;;  %v533_v19 = vrot.slane %v532_v18, 2 }
 0x15f   : > { %v444_v25 = vadd.f32 %v443_v57, %v442_v40  ;;  %v622_v15 = vadd.f32 %v621_v39, %v620_v58 }
 0x160   : > { %v638_v22 = vrot.slane %v637_v38, 1  ;;  %v653_v5 = vrot.slane %v652_v50, 1  ;;  %v314_v62 = vrot.slane %v313_v36, 1  ;;  %v534_v48 = vadd.f32 %v533_v19, %v532_v18 }
 0x161   : > { %v445_v27 = vrot.slane %v444_v25, 1  ;;  %v623_v20 = vrot.slane %v622_v15, 2 }
 0x162   : > { %v639_v44 = vadd.f32 %v638_v22, %v637_v38  ;;  %v654_v12 = vadd.f32 %v653_v5, %v652_v50  ;;  %v315_v56 = vadd.f32 %v314_v62, %v313_v36  ;;  %v535_v53 = vrot.slane %v534_v48, 1 }
 0x163   : > { %v624_v4 = vadd.f32 %v623_v20, %v622_v15  ;;  %v446_v0 = vadd.f32 %v445_v27, %v444_v25 }
 0x164   : > { %v640_v49 = vadd.f32 %v639_v44, %v1986_v14  ;;  %v655_v26 = vadd.f32 %v654_v12, %v1989_v16  ;;  %v387_v42 = vsub.f32 0.0, %v315_v56  ;;  %v536_v10 = vadd.f32 %v535_v53, %v534_v48 }
 0x165   : > { %v625_v40 = vrot.slane %v624_v4, 1 }
 0x166   : > { %v2065_v61 = vadd.f32 %v640_v49, %v1870_v34  ;;  %v2068_v7 = vadd.f32 %v655_v26, %v1838_v59  ;;  %v477_v47 = vsub.f32 %v387_v42, %v446_v0  ;;  %v195_v26 = vld [vmem:[#allocation5 + $0x70] sm:$0x3f] }
 0x167   : > { %v626_v18 = vadd.f32 %v625_v40, %v624_v4  ;;  %1036 = vperm.xlu0 %1386, %v195_v26  }
 0x168   : > { %v658_v58 = vperm.slane %v2065_v61, 0  ;;  %v683_v3 = vperm.slane %v2068_v7, 0  ;;  %v567_v63 = vsub.f32 %v477_v47, %v536_v10 }
 0x16a   : > { %v659_v14 = vmul.f32 %v658_v58, %v1800_v31  ;;  %v661_v16 = vmul.f32 %v658_v58, %v1786_v23  ;;  %v662_v8 = vmul.f32 %v658_v58, %v1798_v30  ;;  %v684_v57 = vmul.f32 %v683_v3, %v1778_v21 }
 0x16b   : > { %v686_v39 = vmul.f32 %v683_v3, %v1808_v35  ;;  %v660_v38 = vmul.f32 %v658_v58, %v1811_v37  ;;  %v2081_v25 = vsub.f32 %v567_v63, %v626_v18  ;;  %v687_v15 = vmul.f32 %v683_v3, %v1792_v28 }
 0x16c   : > { %v681_v50 = vadd.f32 %v1922_v9, %v661_v16  ;;  %v679_v36 = vadd.f32 %v1910_v43, %v659_v14  ;;  %v682_v19 = vadd.f32 %v1967_v6, %v662_v8  ;;  %v685_v5 = vmul.f32 %v683_v3, %v1788_v24  ;;  %v194_v9 = vld [vmem:[#allocation5 + $0x68] sm:$0x7] }
 0x16d   : > { %v680_v22 = vadd.f32 %v1935_v13, %v660_v38  ;;  %1025 = vperm.xlu1 %1385, %v194_v9   ;;  %1020 = vperm.xlu2 %1384, %v194_v9  }
 0x16e   : > { %v688_v62 = vadd.f32 %v684_v57, %v679_v36  ;;  %v690_v48 = vadd.f32 %v686_v39, %v681_v50  ;;  %v691_v20 = vadd.f32 %v687_v15, %v682_v19  ;;  %v2293_v19 = vmov 0   ;;  %v196_v15 = vld [vmem:[#allocation5 + $0x78] sm:$0x1] }
 0x16f   : > { %v689_v27 = vadd.f32 %v685_v5, %v680_v22 }
 0x170   : > { %1425 = vtanh.f32 %v688_v62 }
 0x171   : > { %1427 = vtanh.f32 %v689_v27 }
 0x172   : > { %1429 = vtanh.f32 %v690_v48 }
 0x173   : > { %1431 = vtanh.f32 %v691_v20 }
 0x175   : > { %1387 = vset.pattern.permute.xlu1 %v2293_v19  ;;  %1031 = vperm.xlu2 %1384, %v195_v26  }
 0x176   : > { %v1426_v43 = vpop.eup %1425  ;;  %1060 = vperm.xlu1 %1387, %v196_v15  }
 0x177   : > { %v1428_v6 = vpop.eup %1427  ;;  %v717_v44 = vmul.f32 %v1426_v43, %v1824_v52  ;;  %v732_v12 = vmul.f32 %v1426_v43, %v1840_v60  ;;  %v696_v13 = vmul.f32 %v1426_v43, %v1426_v43 }
 0x178   : > { %v1430_v56 = vpop.eup %1429  ;;  %v697_v53 = vmul.f32 %v1428_v6, %v1428_v6  ;;  %v718_v4 = vmul.f32 %v1428_v6, %v1794_v29  ;;  %v733_v49 = vmul.f32 %v1428_v6, %v1804_v33  ;;  %v2294_v6 = vmov 2  }
 0x179   : > { %v1432_v42 = vpop.eup %1431  ;;  %v719_v0 = vmul.f32 %v1430_v56, %v1827_v54  ;;  %v700_v10 = vsub.f32 1.0, %v696_v13  ;;  %v698_v47 = vmul.f32 %v1430_v56, %v1430_v56  ;;  %v734_v3 = vmul.f32 %v1430_v56, %v1822_v51  ;;  %1390 = vset.pattern.permute.xlu0 %v2294_v6 }
 0x17a   : > { %v701_v40 = vsub.f32 1.0, %v697_v53  ;;  %v721_v58 = vadd.f32 %v718_v4, %v717_v44  ;;  %v736_v63 = vadd.f32 %v733_v49, %v732_v12  ;;  %v720_v14 = vmul.f32 %v1432_v42, %v1864_v17 }
 0x17b   : > { %v704_v16 = vmul.f32 %v700_v10, %v2034_v45  ;;  %v699_v8 = vmul.f32 %v1432_v42, %v1432_v42  ;;  %v702_v18 = vsub.f32 1.0, %v698_v47  ;;  %v735_v38 = vmul.f32 %v1432_v42, %v1848_v2 }
 0x17c   : > { %v722_v57 = vadd.f32 %v721_v58, %v719_v0  ;;  %v737_v39 = vadd.f32 %v736_v63, %v734_v3  ;;  %v705_v50 = vmul.f32 %v701_v40, %v2025_v55  ;;  %v2295_v49 = vmov 1  }
 0x17d   : > { %v703_v36 = vsub.f32 1.0, %v699_v8  ;;  %v706_v48 = vmul.f32 %v702_v18, %v2029_v11  ;;  %1388 = vset.pattern.permute.xlu2 %v2295_v49 }
 0x17e   : > { %v723_v22 = vadd.f32 %v722_v57, %v720_v14  ;;  %v738_v5 = vadd.f32 %v737_v39, %v735_v38  ;;  %v708_v62 = vadd.f32 %v705_v50, %v704_v16  ;;  %1389 = vset.pattern.permute.xlu1 %v2294_v6  ;;  %1103 = vperm.xlu2 %1388, %v196_v15  }
 0x17f   : > { %v707_v9 = vmul.f32 %v703_v36, %v2051_v46  ;;  %1146 = vperm.xlu1 %1389, %v196_v15  }
 0x180   : > { %v724_v27 = vrot.slane %v723_v22, 4  ;;  %v739_v20 = vrot.slane %v738_v5, 4  ;;  %v709_v43 = vadd.f32 %v708_v62, %v706_v48 }
 0x182   : > { %v725_v44 = vadd.f32 %v724_v27, %v723_v22  ;;  %v740_v12 = vadd.f32 %v739_v20, %v738_v5  ;;  %v710_v13 = vadd.f32 %v709_v43, %v707_v9  ;;  %v2296_v27 = vld [vmem:[#allocation11_spill] sm:$0xff]  ;;  %v2297_v43 = vld [vmem:[#allocation12_spill] sm:$0xff] }
 0x184   : > { %v726_v56 = vrot.slane %v725_v44, 2  ;;  %v741_v53 = vrot.slane %v740_v12, 2  ;;  %v711_v4 = vrot.slane %v710_v13, 4 }
 0x186   : > { %v727_v26 = vadd.f32 %v726_v56, %v725_v44  ;;  %v742_v42 = vadd.f32 %v741_v53, %v740_v12  ;;  %v712_v0 = vadd.f32 %v711_v4, %v710_v13 }
 0x188   : > { %v728_v10 = vrot.slane %v727_v26, 1  ;;  %v743_v47 = vrot.slane %v742_v42, 1  ;;  %v713_v40 = vrot.slane %v712_v0, 2 }
 0x18a   : > { %v729_v58 = vadd.f32 %v728_v10, %v727_v26  ;;  %v744_v3 = vadd.f32 %v743_v47, %v742_v42  ;;  %v714_v63 = vadd.f32 %v713_v40, %v712_v0 }
 0x18c   : > { %v730_v14 = vadd.f32 %v729_v58, %v2065_v61  ;;  %v745_v16 = vadd.f32 %v744_v3, %v2068_v7  ;;  %v715_v8 = vrot.slane %v714_v63, 1 }
 0x18e   : > { %v2105_v18 = vadd.f32 %v730_v14, %v1870_v34  ;;  %v2108_v57 = vadd.f32 %v745_v16, %v1838_v59  ;;  %v2110_v39 = vadd.f32 %v715_v8, %v714_v63 }
 0x190   : > { %v748_v38 = vperm.slane %v2105_v18, 0  ;;  %v773_v50 = vperm.slane %v2108_v57, 0  ;;  %v747_v36 = vsub.f32 %v2081_v25, %v2110_v39  ;;  %v2299_v39 = vld [vmem:[#allocation13_spill] sm:$0xff] }
 0x192   : > { %v749_v61 = vmul.f32 %v748_v38, %v1800_v31  ;;  %v750_v7 = vmul.f32 %v748_v38, %v1811_v37  ;;  %v752_v19 = vmul.f32 %v748_v38, %v1798_v30  ;;  %v774_v15 = vmul.f32 %v773_v50, %v1778_v21 }
 0x193   : > { %v775_v22 = vmul.f32 %v773_v50, %v1788_v24  ;;  %v751_v5 = vmul.f32 %v748_v38, %v1786_v23  ;;  %v777_v9 = vmul.f32 %v773_v50, %v1792_v28  ;;  %v776_v44 = vmul.f32 %v773_v50, %v1808_v35 }
 0x194   : > { %v769_v62 = vadd.f32 %v1951_v32, %v749_v61  ;;  %v770_v48 = vadd.f32 %v1927_v41, %v750_v7  ;;  %v772_v20 = vadd.f32 %v2296_v27, %v752_v19 }
 0x195   : > { %v771_v6 = vadd.f32 %v2297_v43, %v751_v5 }
 0x196   : > { %v778_v12 = vadd.f32 %v774_v15, %v769_v62  ;;  %v779_v13 = vadd.f32 %v775_v22, %v770_v48  ;;  %v781_v56 = vadd.f32 %v777_v9, %v772_v20 }
 0x197   : > { %v780_v53 = vadd.f32 %v776_v44, %v771_v6 }
 0x198   : > { %1433 = vtanh.f32 %v778_v12 }
 0x199   : > { %1435 = vtanh.f32 %v779_v13 }
 0x19a   : > { %1437 = vtanh.f32 %v781_v56 }
 0x19b   : > { %1439 = vtanh.f32 %v780_v53 }
 0x19e   : > { %v1434_v4 = vpop.eup %1433 }
 0x19f   : > { %v1436_v32 = vpop.eup %1435  ;;  %v786_v49 = vmul.f32 %v1434_v4, %v1434_v4  ;;  %v807_v41 = vmul.f32 %v1434_v4, %v1824_v52  ;;  %v822_v26 = vmul.f32 %v1434_v4, %v1840_v60 }
 0x1a0   : > { %v1438_v42 = vpop.eup %1437  ;;  %v808_v0 = vmul.f32 %v1436_v32, %v1794_v29  ;;  %v823_v10 = vmul.f32 %v1436_v32, %v1804_v33  ;;  %v787_v47 = vmul.f32 %v1436_v32, %v1436_v32 }
 0x1a1   : > { %v1440_v40 = vpop.eup %1439  ;;  %v790_v58 = vsub.f32 1.0, %v786_v49  ;;  %v789_v3 = vmul.f32 %v1438_v42, %v1438_v42  ;;  %v810_v15 = vmul.f32 %v1438_v42, %v1864_v17  ;;  %v825_v22 = vmul.f32 %v1438_v42, %v1848_v2 }
 0x1a2   : > { %v811_v63 = vadd.f32 %v808_v0, %v807_v41  ;;  %v826_v14 = vadd.f32 %v823_v10, %v822_v26  ;;  %v788_v16 = vmul.f32 %v1440_v40, %v1440_v40  ;;  %v809_v8 = vmul.f32 %v1440_v40, %v1827_v54 }
 0x1a3   : > { %v824_v38 = vmul.f32 %v1440_v40, %v1822_v51  ;;  %v791_v50 = vsub.f32 1.0, %v787_v47  ;;  %v794_v61 = vmul.f32 %v790_v58, %v2034_v45  ;;  %v793_v48 = vsub.f32 1.0, %v789_v3 }
 0x1a4   : > { %v792_v7 = vsub.f32 1.0, %v788_v16  ;;  %v812_v19 = vadd.f32 %v811_v63, %v809_v8 }
 0x1a5   : > { %v827_v5 = vadd.f32 %v826_v14, %v824_v38  ;;  %v795_v62 = vmul.f32 %v791_v50, %v2025_v55  ;;  %v797_v12 = vmul.f32 %v793_v48, %v2051_v46 }
 0x1a6   : > { %v813_v27 = vadd.f32 %v812_v19, %v810_v15  ;;  %v796_v20 = vmul.f32 %v792_v7, %v2029_v11 }
 0x1a7   : > { %v828_v9 = vadd.f32 %v827_v5, %v825_v22  ;;  %v798_v43 = vadd.f32 %v795_v62, %v794_v61 }
 0x1a8   : > { %v814_v6 = vrot.slane %v813_v27, 4 }
 0x1a9   : > { %v829_v44 = vrot.slane %v828_v9, 4  ;;  %v799_v13 = vadd.f32 %v798_v43, %v796_v20  ;;  %v2300_v43 = vld [vmem:[#allocation16_spill] sm:$0xff] }
 0x1aa   : > { %v815_v56 = vadd.f32 %v814_v6, %v813_v27 }
 0x1ab   : > { %v830_v53 = vadd.f32 %v829_v44, %v828_v9  ;;  %v800_v4 = vadd.f32 %v799_v13, %v797_v12  ;;  %v2298_v9 = vld [vmem:[#allocation14_spill] sm:$0xff] }
 0x1ac   : > { %v816_v32 = vrot.slane %v815_v56, 2 }
 0x1ad   : > { %v831_v49 = vrot.slane %v830_v53, 2  ;;  %v801_v41 = vrot.slane %v800_v4, 4 }
 0x1ae   : > { %v817_v26 = vadd.f32 %v816_v32, %v815_v56 }
 0x1af   : > { %v832_v42 = vadd.f32 %v831_v49, %v830_v53  ;;  %v802_v0 = vadd.f32 %v801_v41, %v800_v4 }
 0x1b0   : > { %v818_v10 = vrot.slane %v817_v26, 1 }
 0x1b1   : > { %v833_v47 = vrot.slane %v832_v42, 1  ;;  %v803_v40 = vrot.slane %v802_v0, 2 }
 0x1b2   : > { %v819_v58 = vadd.f32 %v818_v10, %v817_v26 }
 0x1b3   : > { %v834_v3 = vadd.f32 %v833_v47, %v832_v42  ;;  %v804_v63 = vadd.f32 %v803_v40, %v802_v0 }
 0x1b4   : > { %v820_v14 = vadd.f32 %v819_v58, %v2105_v18 }
 0x1b5   : > { %v835_v16 = vadd.f32 %v834_v3, %v2108_v57  ;;  %v805_v8 = vrot.slane %v804_v63, 1 }
 0x1b6   : > { %v2143_v38 = vadd.f32 %v820_v14, %v1870_v34 }
 0x1b7   : > { %v2146_v50 = vadd.f32 %v835_v16, %v1838_v59  ;;  %v806_v61 = vadd.f32 %v805_v8, %v804_v63 }
 0x1b8   : > { %v838_v7 = vperm.slane %v2143_v38, 0 }
 0x1b9   : > { %v863_v19 = vperm.slane %v2146_v50, 0  ;;  %v2153_v15 = vsub.f32 %v747_v36, %v806_v61 }
 0x1ba   : > { %v839_v18 = vmul.f32 %v838_v7, %v1800_v31  ;;  %v840_v57 = vmul.f32 %v838_v7, %v1811_v37  ;;  %v841_v22 = vmul.f32 %v838_v7, %v1786_v23  ;;  %v842_v5 = vmul.f32 %v838_v7, %v1798_v30 }
 0x1bb   : > { %v864_v62 = vmul.f32 %v863_v19, %v1778_v21  ;;  %v865_v48 = vmul.f32 %v863_v19, %v1788_v24  ;;  %v866_v27 = vmul.f32 %v863_v19, %v1808_v35  ;;  %v867_v44 = vmul.f32 %v863_v19, %v1792_v28 }
 0x1bc   : > { %v859_v20 = vadd.f32 %v1977_v1, %v839_v18  ;;  %v860_v25 = vadd.f32 %v2298_v9, %v840_v57  ;;  %v861_v36 = vadd.f32 %v2299_v39, %v841_v22  ;;  %v862_v6 = vadd.f32 %v2300_v43, %v842_v5 }
 0x1be   : > { %v868_v12 = vadd.f32 %v864_v62, %v859_v20  ;;  %v869_v13 = vadd.f32 %v865_v48, %v860_v25  ;;  %v870_v56 = vadd.f32 %v866_v27, %v861_v36  ;;  %v871_v53 = vadd.f32 %v867_v44, %v862_v6 }
 0x1c0   : > { %1441 = vtanh.f32 %v868_v12 }
 0x1c1   : > { %1443 = vtanh.f32 %v869_v13 }
 0x1c2   : > { %1445 = vtanh.f32 %v870_v56 }
 0x1c3   : > { %1447 = vtanh.f32 %v871_v53 }
 0x1c6   : > { %v1442_v4 = vpop.eup %1441 }
 0x1c7   : > { %v1444_v32 = vpop.eup %1443  ;;  %v897_v1 = vmul.f32 %v1442_v4, %v1824_v52  ;;  %v912_v49 = vmul.f32 %v1442_v4, %v1840_v60  ;;  %v876_v41 = vmul.f32 %v1442_v4, %v1442_v4 }
 0x1c8   : > { %v1446_v26 = vpop.eup %1445  ;;  %v877_v42 = vmul.f32 %v1444_v32, %v1444_v32  ;;  %v898_v0 = vmul.f32 %v1444_v32, %v1794_v29  ;;  %v913_v10 = vmul.f32 %v1444_v32, %v1804_v33 }
 0x1c9   : > { %v1448_v47 = vpop.eup %1447  ;;  %v899_v40 = vmul.f32 %v1446_v26, %v1827_v54  ;;  %v914_v58 = vmul.f32 %v1446_v26, %v1822_v51  ;;  %v880_v3 = vsub.f32 1.0, %v876_v41  ;;  %v878_v63 = vmul.f32 %v1446_v26, %v1446_v26 }
 0x1ca   : > { %v881_v14 = vsub.f32 1.0, %v877_v42  ;;  %v901_v16 = vadd.f32 %v898_v0, %v897_v1  ;;  %v916_v8 = vadd.f32 %v913_v10, %v912_v49  ;;  %v879_v61 = vmul.f32 %v1448_v47, %v1448_v47 }
 0x1cb   : > { %v900_v7 = vmul.f32 %v1448_v47, %v1864_v17  ;;  %v915_v19 = vmul.f32 %v1448_v47, %v1848_v2  ;;  %v884_v18 = vmul.f32 %v880_v3, %v2034_v45  ;;  %v882_v57 = vsub.f32 1.0, %v878_v63 }
 0x1cc   : > { %v885_v22 = vmul.f32 %v881_v14, %v2025_v55  ;;  %v883_v5 = vsub.f32 1.0, %v879_v61  ;;  %v902_v62 = vadd.f32 %v901_v16, %v899_v40  ;;  %v917_v48 = vadd.f32 %v916_v8, %v914_v58 }
 0x1cd   : > { %v886_v25 = vmul.f32 %v882_v57, %v2029_v11 }
 0x1ce   : > { %v903_v27 = vadd.f32 %v902_v62, %v900_v7  ;;  %v918_v20 = vadd.f32 %v917_v48, %v915_v19  ;;  %v888_v9 = vadd.f32 %v885_v22, %v884_v18  ;;  %v887_v43 = vmul.f32 %v883_v5, %v2051_v46  ;;  %v2301_v62 = vld [vmem:[#allocation15_spill] sm:$0xff] }
 0x1d0   : > { %v919_v39 = vrot.slane %v918_v20, 4  ;;  %v904_v36 = vrot.slane %v903_v27, 4  ;;  %v889_v6 = vadd.f32 %v888_v9, %v886_v25  ;;  %v2303_v9 = vld [vmem:[#allocation19_spill] sm:$0xff] }
 0x1d2   : > { %v905_v44 = vadd.f32 %v904_v36, %v903_v27  ;;  %v920_v12 = vadd.f32 %v919_v39, %v918_v20  ;;  %v890_v13 = vadd.f32 %v889_v6, %v887_v43  ;;  %v2302_v27 = vld [vmem:[#allocation18_spill] sm:$0xff]  ;;  %v2304_v39 = vld [vmem:[#allocation17_spill] sm:$0xff] }
 0x1d4   : > { %v906_v56 = vrot.slane %v905_v44, 2  ;;  %v921_v53 = vrot.slane %v920_v12, 2  ;;  %v891_v4 = vrot.slane %v890_v13, 4 }
 0x1d6   : > { %v907_v32 = vadd.f32 %v906_v56, %v905_v44  ;;  %v922_v1 = vadd.f32 %v921_v53, %v920_v12  ;;  %v892_v49 = vadd.f32 %v891_v4, %v890_v13 }
 0x1d8   : > { %v908_v41 = vrot.slane %v907_v32, 1  ;;  %v923_v26 = vrot.slane %v922_v1, 1  ;;  %v893_v42 = vrot.slane %v892_v49, 2 }
 0x1da   : > { %v909_v0 = vadd.f32 %v908_v41, %v907_v32  ;;  %v924_v10 = vadd.f32 %v923_v26, %v922_v1  ;;  %v894_v47 = vadd.f32 %v893_v42, %v892_v49 }
 0x1dc   : > { %v910_v40 = vadd.f32 %v909_v0, %v2143_v38  ;;  %v925_v58 = vadd.f32 %v924_v10, %v2146_v50  ;;  %v895_v3 = vrot.slane %v894_v47, 1 }
 0x1de   : > { %v2182_v63 = vadd.f32 %v910_v40, %v1870_v34  ;;  %v2185_v14 = vadd.f32 %v925_v58, %v1838_v59  ;;  %v2187_v16 = vadd.f32 %v895_v3, %v894_v47 }
 0x1e0   : > { %v928_v8 = vperm.slane %v2182_v63, 0  ;;  %v953_v61 = vperm.slane %v2185_v14, 0  ;;  %v927_v7 = vsub.f32 %v2153_v15, %v2187_v16 }
 0x1e2   : > { %v929_v38 = vmul.f32 %v928_v8, %v1800_v31  ;;  %v930_v50 = vmul.f32 %v928_v8, %v1811_v37  ;;  %v931_v19 = vmul.f32 %v928_v8, %v1786_v23  ;;  %v932_v18 = vmul.f32 %v928_v8, %v1798_v30 }
 0x1e3   : > { %v954_v57 = vmul.f32 %v953_v61, %v1778_v21  ;;  %v955_v22 = vmul.f32 %v953_v61, %v1788_v24  ;;  %v956_v5 = vmul.f32 %v953_v61, %v1808_v35  ;;  %v957_v37 = vmul.f32 %v953_v61, %v1792_v28 }
 0x1e4   : > { %v949_v48 = vadd.f32 %v2301_v62, %v929_v38  ;;  %v950_v20 = vadd.f32 %v2302_v27, %v930_v50  ;;  %v951_v25 = vadd.f32 %v2303_v9, %v931_v19  ;;  %v952_v31 = vadd.f32 %v2304_v39, %v932_v18  ;;  %v1021_v62 = vpop.permute.xlu2 %1020 }
 0x1e6   : > { %v958_v36 = vadd.f32 %v954_v57, %v949_v48  ;;  %v959_v23 = vadd.f32 %v955_v22, %v950_v20  ;;  %v960_v43 = vadd.f32 %v956_v5, %v951_v25  ;;  %v961_v30 = vadd.f32 %v957_v37, %v952_v31  ;;  %v1026_v20 = vpop.permute.xlu1 %1025 }
 0x1e7   : > { %v1115_v31 = vrot.slane %v1026_v20, 2 }
 0x1e8   : > { %1449 = vtanh.f32 %v958_v36 }
 0x1e9   : > { %1451 = vtanh.f32 %v959_v23  ;;  %v1069_v23 = vrot.slane %v1021_v62, 1 }
 0x1ea   : > { %1453 = vtanh.f32 %v960_v43  ;;  %v1112_v43 = vrot.slane %v1021_v62, 2 }
 0x1eb   : > { %1455 = vtanh.f32 %v961_v30 }
 0x1ee   : > { %v1450_v21 = vpop.eup %1449 }
 0x1ef   : > { %v1452_v24 = vpop.eup %1451  ;;  %v987_v35 = vmul.f32 %v1450_v21, %v1824_v52  ;;  %v1002_v6 = vmul.f32 %v1450_v21, %v1840_v60  ;;  %v966_v44 = vmul.f32 %v1450_v21, %v1450_v21 }
 0x1f0   : > { %v1454_v12 = vpop.eup %1453  ;;  %v988_v13 = vmul.f32 %v1452_v24, %v1794_v29  ;;  %v1003_v28 = vmul.f32 %v1452_v24, %v1804_v33  ;;  %v967_v56 = vmul.f32 %v1452_v24, %v1452_v24 }
 0x1f1   : > { %v1456_v53 = vpop.eup %1455  ;;  %v989_v4 = vmul.f32 %v1454_v12, %v1827_v54  ;;  %v970_v32 = vsub.f32 1.0, %v966_v44  ;;  %v1004_v49 = vmul.f32 %v1454_v12, %v1822_v51  ;;  %v968_v42 = vmul.f32 %v1454_v12, %v1454_v12 }
 0x1f2   : > { %v991_v1 = vadd.f32 %v988_v13, %v987_v35  ;;  %v1006_v41 = vadd.f32 %v1003_v28, %v1002_v6  ;;  %v971_v26 = vsub.f32 1.0, %v967_v56  ;;  %v990_v60 = vmul.f32 %v1456_v53, %v1864_v17  ;;  %v1037_v6 = vpop.permute.xlu0 %1036  ;;  %v1032_v56 = vpop.permute.xlu2 %1031 }
 0x1f3   : > { %v1005_v10 = vmul.f32 %v1456_v53, %v1848_v2  ;;  %v974_v29 = vmul.f32 %v970_v32, %v2034_v45  ;;  %v972_v54 = vsub.f32 1.0, %v968_v42  ;;  %v969_v58 = vmul.f32 %v1456_v53, %v1456_v53 }
 0x1f4   : > { %v992_v52 = vadd.f32 %v991_v1, %v989_v4  ;;  %v1007_v0 = vadd.f32 %v1006_v41, %v1004_v49  ;;  %v975_v33 = vmul.f32 %v971_v26, %v2025_v55 }
 0x1f5   : > { %v976_v50 = vmul.f32 %v972_v54, %v2029_v11  ;;  %v973_v19 = vsub.f32 1.0, %v969_v58  ;;  %v1072_v11 = vrot.slane %v1026_v20, 1 }
 0x1f6   : > { %v993_v47 = vadd.f32 %v992_v52, %v990_v60  ;;  %v1008_v40 = vadd.f32 %v1007_v0, %v1005_v10  ;;  %v978_v51 = vadd.f32 %v975_v33, %v974_v29  ;;  %v1061_v33 = vpop.permute.xlu1 %1060 }
 0x1f7   : > { %v977_v45 = vmul.f32 %v973_v19, %v2051_v46 }
 0x1f8   : > { %v994_v3 = vrot.slane %v993_v47, 4  ;;  %v1009_v8 = vrot.slane %v1008_v40, 4  ;;  %v979_v57 = vadd.f32 %v978_v51, %v976_v50 }
 0x1fa   : > { %v995_v61 = vadd.f32 %v994_v3, %v993_v47  ;;  %v1010_v38 = vadd.f32 %v1009_v8, %v1008_v40  ;;  %v980_v48 = vadd.f32 %v979_v57, %v977_v45 }
 0x1fc   : > { %v996_v18 = vrot.slane %v995_v61, 2  ;;  %v1011_v17 = vrot.slane %v1010_v38, 2  ;;  %v981_v37 = vrot.slane %v980_v48, 4 }
 0x1fe   : > { %v997_v2 = vadd.f32 %v996_v18, %v995_v61  ;;  %v1012_v22 = vadd.f32 %v1011_v17, %v1010_v38  ;;  %v180_v38 = vld [vmem:[%s1713_s6 + $0x2] sm:$0x1] }
 0x1ff   : > { %vm1064_vm0 = vcmp.eq.f32.partialorder %v180_v38, 0.0  ;;  %vm1107_vm1 = vcmp.eq.f32.partialorder %v180_v38, 1.0  ;;  %vm1150_vm2 = vcmp.eq.f32.partialorder %v180_v38, 2.0 }
 0x200   : > { %v998_v55 = vrot.slane %v997_v2, 1  ;;  %v1013_v5 = vrot.slane %v1012_v22, 1 }
 0x202   : > { %v999_v27 = vadd.f32 %v998_v55, %v997_v2  ;;  %v1014_v9 = vadd.f32 %v1013_v5, %v1012_v22 }
 0x204   : > { %v1000_v25 = vadd.f32 %v999_v27, %v2182_v63  ;;  %v1015_v39 = vadd.f32 %v1014_v9, %v2185_v14 }
 0x206   : > { %v2220_v36 = vadd.f32 %v1000_v25, %v1870_v34  ;;  %v2223_v46 = vadd.f32 %v1015_v39, %v1838_v59  ;;  %v982_v34 = vadd.f32 %v981_v37, %v980_v48  ;;  %v1155_v39 = vlaneseq }
 0x208   : > { %v1023_v30 = vsub.f32 %v2220_v36, %v1021_v62  ;;  %v1071_v21 = vsub.f32 %v2220_v36, %v1069_v23  ;;  %v1114_v24 = vsub.f32 %v2220_v36, %v1112_v43  ;;  %v1028_v63 = vsub.f32 %v2223_v46, %v1026_v20 }
 0x209   : > { %v1074_v14 = vsub.f32 %v2223_v46, %v1072_v11  ;;  %v1117_v35 = vsub.f32 %v2223_v46, %v1115_v31  ;;  %v983_v61 = vrot.slane %v982_v34, 2  ;;  %v1600_v23 = vmov 0.0  }
 0x20a   : > { %v1044_v44 = vrot.slane %v1023_v30, 7  ;;  %v1076_v12 = vrot.slane %v1071_v21, 6  ;;  %v1089_v13 = vrot.slane %v1071_v21, 5  ;;  %v1119_v28 = vrot.slane %v1114_v24, 4 }
 0x20b   : > { %v1132_v59 = vrot.slane %v1114_v24, 3  ;;  %v1048_v53 = vrot.slane %v1028_v63, 7  ;;  %v1080_v4 = vrot.slane %v1074_v14, 6  ;;  %v1092_v32 = vrot.slane %v1074_v14, 5 }
 0x20c   : > { %v1123_v1 = vrot.slane %v1117_v35, 4  ;;  %v1135_v49 = vrot.slane %v1117_v35, 3  ;;  %v1039_v41 = vmul.f32 %v1037_v6, %v1028_v63  ;;  %v1034_v26 = vmul.f32 %v1032_v56, %v1023_v30 }
 0x20d   : > { %v1050_v42 = vmul.f32 %v1048_v53, %v1037_v6  ;;  %v1082_v52 = vmul.f32 %v1080_v4, %v1037_v6  ;;  %v1094_v0 = vmul.f32 %v1092_v32, %v1037_v6  ;;  %v1046_v60 = vmul.f32 %v1044_v44, %v1032_v56 }
 0x20e   : > { %v1125_v10 = vmul.f32 %v1123_v1, %v1037_v6  ;;  %v1137_v29 = vmul.f32 %v1135_v49, %v1037_v6  ;;  %v1040_v47 = vadd.f32 %v1039_v41, %v1034_v26  ;;  %v1121_v40 = vmul.f32 %v1119_v28, %v1032_v56 }
 0x20f   : > { %v1051_v54 = vadd.f32 %v1050_v42, %v1046_v60  ;;  %v1134_v58 = vmul.f32 %v1132_v59, %v1032_v56  ;;  %v1078_v3 = vmul.f32 %v1076_v12, %v1032_v56  ;;  %v1091_v8 = vmul.f32 %v1089_v13, %v1032_v56 }
 0x210   : > { %v1126_v51 = vadd.f32 %v1125_v10, %v1121_v40  ;;  %v1041_v57 = vmul.f32 %v1040_v47, %v1023_v30  ;;  %v984_v48 = vadd.f32 %v983_v61, %v982_v34  ;;  %v1276_v43 = vsel %vm1064_vm0, 1.0, %v1600_v23  ;;  %v1147_v30 = vpop.permute.xlu1 %1146 }
 0x211   : > { %v1053_v50 = vrot.slane %v1051_v54, 1  ;;  %v1138_v19 = vadd.f32 %v1137_v29, %v1134_v58  ;;  %v1083_v18 = vadd.f32 %v1082_v52, %v1078_v3  ;;  %v1095_v17 = vadd.f32 %v1094_v0, %v1091_v8 }
 0x212   : > { %v1128_v2 = vrot.slane %v1126_v51, 4  ;;  %v985_v6 = vrot.slane %v984_v48, 1  ;;  %v1277_v34 = vsel %vm1107_vm1, 1.0, %v1600_v23  ;;  %v1156_v13 = vshrl.u32 %v1155_v39, 7 }
 0x213   : > { %v1055_v22 = vmul.f32 %v1053_v50, %v1028_v63  ;;  %v1140_v45 = vrot.slane %v1138_v19, 5  ;;  %v1085_v55 = vrot.slane %v1083_v18, 2  ;;  %v1097_v5 = vrot.slane %v1095_v17, 3  ;;  %v1104_v63 = vpop.permute.xlu2 %1103 }
 0x214   : > { %v1130_v62 = vmul.f32 %v1128_v2, %v1114_v24  ;;  %v1278_v28 = vsel %vm1150_vm2, 1.0, %v1600_v23  ;;  %v986_v59 = vadd.f32 %v985_v6, %v984_v48  ;;  %v1158_v53 = vperm.slane %v2220_v36, 0 }
 0x215   : > { %v1056_v27 = vadd.f32 %v1055_v22, %v1041_v57  ;;  %v1142_v20 = vmul.f32 %v1140_v45, %v1117_v35  ;;  %v1087_v9 = vmul.f32 %v1085_v55, %v1071_v21  ;;  %v1099_v25 = vmul.f32 %v1097_v5, %v1074_v14 }
 0x216   : > { %vm1157_vm3 = vcmp.eq.s32.totalorder %v1156_v13, 0  ;;  %v1017_v1 = vsub.f32 %v927_v7, %v986_v59  ;;  %v1161_v49 = vperm.slane %v2223_v46, 0  ;;  %vm1160_vm4 = vcmp.eq.s32.totalorder %v1156_v13, 1 }
 0x217   : > { %v1057_v11 = vmul.f32 -0.5, %v1056_v27  ;;  %v1143_v31 = vadd.f32 %v1142_v20, %v1130_v62  ;;  %v1100_v37 = vadd.f32 %v1099_v25, %v1087_v9  ;;  %v1159_v26 = vsel %vm1157_vm3, %v1158_v53, 0.0 }
 0x218   : > { %vm1163_vm5 = vcmp.eq.s32.totalorder %v1156_v13, 2  ;;  %vm1166_vm6 = vcmp.eq.s32.totalorder %v1156_v13, 3  ;;  %v1162_v42 = vsel %vm1160_vm4, %v1161_v49, %v1159_v26  ;;  %v1167_v52 = vsub.f32 0.0, %v1017_v1 }
 0x219   : > { %v1063_v44 = vsub.f32 %v1057_v11, %v1061_v33  ;;  %v1144_v12 = vmul.f32 -0.5, %v1143_v31  ;;  %v1101_v24 = vmul.f32 -0.5, %v1100_v37 }
 0x21b   : > { %v1067_v35 = vmul.f32 %v1276_v43, %v1063_v44  ;;  %v1149_v21 = vsub.f32 %v1144_v12, %v1147_v30  ;;  %v1106_v14 = vsub.f32 %v1101_v24, %v1104_v63 }
 0x21d   : > { %v1110_v56 = vmul.f32 %v1277_v34, %v1106_v14  ;;  %v1153_v4 = vmul.f32 %v1278_v28, %v1149_v21 }
 0x21f   : > { %v1111_v32 = vadd.f32 %v1110_v56, %v1067_v35 }
 0x221   : > { %v1154_v41 = vadd.f32 %v1153_v4, %v1111_v32 }
 0x223   : > { %v1164_v36 = vperm.slane %v1154_v41, 0 }
 0x225   : > { %v1165_v0 = vsel %vm1163_vm5, %v1164_v36, %v1162_v42 }
 0x226   : > { %v1168_v15 = vsel %vm1166_vm6, %v1167_v52, %v1165_v0 }
 0x227   : > { %1169 = vst [vmem:[%s177_s16] sm:$0xff] %v1168_v15 }
 0x228   : > { %1544 = shalt.err (!%p1541_p9)
}
 0x229   : > { %1289 = dma.vmem_to_hbm [thread:$0]  (%p1676_p13), %s1184_s13, 128, %s1186_s14, %s1171_s15  }
 0x22a PF: > { %s1197_s3 = sand.u32 1, %s1575_s9   ;;  %p2305_p10 = scmp.ge.s32.totalorder %s1587_s12, 2 }
 0x22b   : > { %s1198_s29 = scalar_lea.sflag [#allocation4], %s1197_s3 }
 0x22c   : > { %p1300_p11 = pnand %p2305_p10, %p1681_p4 }
 0x22e   : > { %p1301_p0 = pneg %p1300_p11 }
 0x230   : > { %1570 = dma.done.wait (%p1301_p0), %s1198_s29, 128  }
 0x231   : > { %1572 = vsyncadd (%p1301_p0), %s1198_s29, 4294967168  ;;  %p16_p2 = scmp.ge.s32.totalorder %s1656_s23, 4   ;;  %s2306_s9 = smov %s1579_s10 }
 0x232   : > { %s2307_s10 = smov %s1583_s11  ;;  %s2308_s11 = smov %s1668_s26 }
 0x233   : > { %s2309_s12 = smov %s1656_s23  ;;  %18 = sbr.rel (!%p16_p2) target bundleno = 6 (0x6), region = 77 }
 0x238   :  { %1204 = vsyncpa [#allocation3], 1 }
 0x239   :  { %1206 = vsyncpa [#allocation3 + $0x1], 1 }
 0x23a   :  { %1207 = vsyncpa [#allocation6], 1 }
 0x23b   :  { %1208 = vsyncpa [#allocation4], 1 }
 0x23c   :  { %1210 = vsyncpa [#allocation4 + $0x1], 1 }

</bundles_post_ra>
